<compile_context>
chip_gen: v7x
topology: tpu7x:2x2x1
jax: 0.10.0
libtpu: 0.0.40
codegen_flags: <defaults>
</compile_context>

<pallas_src>
import functools
import math

import jax
import jax.numpy as jnp
from jax.experimental import pallas as pl
from jax.experimental.pallas import tpu as pltpu


def _nerf_encode_kernel(x2_ref, freq_ref, out_ref):
    """Lane-dense fused NeRF encoding tile.

    x2_ref:   (1, TL)  f32  coordinates, each duplicated into adjacent lanes
                            (even lane 2d and odd lane 2d+1 both hold x[d]).
    freq_ref: (N, 1)   f32  pi * 2**n frequency column.
    out_ref:  (N, TL)  f32  interleaved block: even lanes sin, odd lanes cos.
    """
    inside = freq_ref[...] * x2_ref[...]          # (N, TL) via lane+sublane broadcast
    lane = jax.lax.broadcasted_iota(jnp.int32, inside.shape, dimension=1)
    even = (lane & 1) == 0                        # global parity == local parity
    out_ref[...] = jnp.where(even, jnp.sin(inside), jnp.cos(inside))


def _round_up(x: int, m: int) -> int:
    return ((x + m - 1) // m) * m


@functools.partial(jax.jit, static_argnames=("N", "tile_lanes"))
def vanilla_nerf_encode(x: jax.Array, N: int, tile_lanes: int = 8192) -> jax.Array:
    """JAX/Pallas equivalent of VanillaNeRFEncoder(N).forward(X).

    x: (D, 1) float32 column of coordinates.
    returns: (2*D*N,) float32, ordering identical to the torch module.

    NOTE: for tiny D (a handful of coordinates) the fixed pallas_call overhead
    dominates -- batch many coordinates per call for the kernel to pay off.
    """
    assert x.ndim == 2 and x.shape[1] == 1, "expected X of shape (D, 1)"
    D = x.shape[0]
    W = 2 * D                                      # interleaved output columns

    # Lane tile: multiple of 128, clamped to the (padded) problem width.
    tl = max(128, min(_round_up(tile_lanes, 128), _round_up(W, 128)))
    Wp = _round_up(W, tl)
    grid = Wp // tl

    # Tiny O(D)+O(N) wrapper glue: frequency column and lane-duplicated coords.
    raised = 2.0 ** jnp.arange(N, dtype=jnp.float32)        # exact powers of two
    freq = (raised * math.pi).reshape(N, 1)                 # same mul order as torch
    x2 = jnp.repeat(x.reshape(-1).astype(jnp.float32), 2)   # (2*D,) [x0,x0,x1,x1,...]
    x2 = jnp.pad(x2, (0, Wp - W)).reshape(1, Wp)

    interleaved = pl.pallas_call(
        _nerf_encode_kernel,
        out_shape=jax.ShapeDtypeStruct((N, Wp), jnp.float32),
        grid=(grid,),
        in_specs=[
            pl.BlockSpec((1, tl), lambda j: (0, j)),     # coords tile (lane-dense)
            pl.BlockSpec((N, 1), lambda j: (0, 0)),      # frequency column (shared)
        ],
        out_specs=pl.BlockSpec((N, tl), lambda j: (0, j)),
        compiler_params=pltpu.CompilerParams(
            dimension_semantics=("parallel",),           # pipeline + megacore shard
        ),
    )(x2, freq)

    # Already in torch's interleaved order: drop lane padding, flatten row-major.
    return interleaved[:, :W].reshape(-1)


def _reference(x: jax.Array, N: int) -> jax.Array:
    """Pure-JAX line-by-line mirror of the torch forward, for verification."""
    raised = 2.0 ** jnp.linspace(0.0, N - 1, N, dtype=jnp.float32)
    inside = raised * math.pi * x                              # (D, N)
    stacked = jnp.stack((jnp.sin(inside), jnp.cos(inside)))    # (2, D, N)
    return jnp.transpose(stacked, (2, 1, 0)).reshape(-1)       # .T.flatten()


if __name__ == "__main__":
    N = 16     # frequency bands
    D = 1000   # coordinates encoded at once (exercises lane padding + 2-step grid)

    key = jax.random.PRNGKey(0)
    x = jax.random.uniform(key, (D, 1), dtype=jnp.float32, minval=-1.0, maxval=1.0)

    out = vanilla_nerf_encode(x, N, tile_lanes=1024)
    out = jax.block_until_ready(out)

    ref = _reference(x, N)
    assert out.shape == (2 * D * N,), out.shape
    assert jnp.allclose(out, ref, atol=2e-5, rtol=2e-5), float(
        jnp.max(jnp.abs(out - ref))
    )

    print("KERNEL_OK")
</pallas_src>

<mosaic_0001>
module attributes {stable_mosaic.version = 11 : i64} {
  func.func @_nerf_encode_kernel(%arg0: i32, %arg1: memref<1x1024xf32, #tpu.memory_space<vmem>>, %arg2: memref<16x1xf32, #tpu.memory_space<vmem>>, %arg3: memref<16x1024xf32, #tpu.memory_space<vmem>>) attributes {dimension_semantics = [#tpu.dimension_semantics<parallel>], iteration_bounds = array<i64: 2>, scalar_prefetch = 0 : i64, scratch_operands = 0 : i64, tpu.core_type = #tpu.core_type<tc>, window_params = [{transform_indices = @transform_0, window_bounds = array<i64: 1, 1024>}, {pipeline_mode = #tpu.pipeline_mode<synchronous>, transform_indices = @transform_1, window_bounds = array<i64: 16, 1>}, {transform_indices = @transform_2, window_bounds = array<i64: 16, 1024>}]} {
    %c0 = arith.constant 0 : index
    %c0_0 = arith.constant 0 : index
    %0 = vector.load %arg2[%c0, %c0_0] : memref<16x1xf32, #tpu.memory_space<vmem>>, vector<16x1xf32>
    %c0_1 = arith.constant 0 : index
    %c0_2 = arith.constant 0 : index
    %1 = vector.load %arg1[%c0_1, %c0_2] : memref<1x1024xf32, #tpu.memory_space<vmem>>, vector<1x1024xf32>
    %2 = vector.broadcast %0 : vector<16x1xf32> to vector<16x1024xf32>
    %3 = vector.broadcast %1 : vector<1x1024xf32> to vector<16x1024xf32>
    %4 = arith.mulf %2, %3 : vector<16x1024xf32>
    %5 = tpu.iota {dimensions = array<i32: 1>} : vector<16x1024xi32>
    %c1_i32 = arith.constant 1 : i32
    %6 = vector.broadcast %c1_i32 : i32 to vector<16x1024xi32>
    %7 = arith.andi %5, %6 : vector<16x1024xi32>
    %c0_i32 = arith.constant 0 : i32
    %8 = vector.broadcast %c0_i32 : i32 to vector<16x1024xi32>
    %9 = arith.cmpi eq, %7, %8 : vector<16x1024xi32>
    %10 = math.sin %4 : vector<16x1024xf32>
    %11 = math.cos %4 : vector<16x1024xf32>
    %12 = arith.select %9, %10, %11 : vector<16x1024xi1>, vector<16x1024xf32>
    %c0_3 = arith.constant 0 : index
    %c0_4 = arith.constant 0 : index
    %13 = vector.load %arg3[%c0_3, %c0_4] : memref<16x1024xf32, #tpu.memory_space<vmem>>, vector<16x1024xf32>
    tpu.vector_store %arg3[%c0_3, %c0_4], %12 {strides = array<i32>} : memref<16x1024xf32, #tpu.memory_space<vmem>>, vector<16x1024xf32>,
    return
  }
  func.func @transform_0(%arg0: i32) -> (i32, i32) {
    %c0_i32 = arith.constant 0 : i32
    %c0_i32_0 = arith.constant 0 : i32
    return %c0_i32, %arg0 : i32, i32
  }
  func.func @transform_1(%arg0: i32) -> (i32, i32) {
    %c0_i32 = arith.constant 0 : i32
    %c0_i32_0 = arith.constant 0 : i32
    %c0_i32_1 = arith.constant 0 : i32
    return %c0_i32, %c0_i32_0 : i32, i32
  }
  func.func @transform_2(%arg0: i32) -> (i32, i32) {
    %c0_i32 = arith.constant 0 : i32
    %c0_i32_0 = arith.constant 0 : i32
    return %c0_i32, %arg0 : i32, i32
  }
}

</mosaic_0001>

<bundles_post_ra>
// kernel: vanilla_nerf_encode.1
= control target key start
LH: loop header
LB: loop body
LE: loop exit
PB: predicated region body
PF: predicated region fallthrough
CT: control target
= control target key end

     0   :  { %s4028_s9 = smov 0   ;;  %s4030_s10 = smov 0   ;;  %s6238_s0 = inlined_call_operand.vmem [shape: f32[1,2048], index: 0, kind: input, shape index: {}]   ;;  %s6239_s1 = inlined_call_operand.vmem [shape: f32[16,1], index: 1, kind: input, shape index: {}]   ;;  %s6240_s2 = inlined_call_operand.vmem [shape: f32[16,2048], index: 2, kind: output, shape index: {}]  }
   0x1   :  { %s4032_s11 = smov 0  }
   0x2 LB: > { %s4041_s12 = sadd.s32 4294967295, %s4004_s11   ;;  %s4043_s13 = sadd.s32 1, %s4004_s11   ;;  %s4004_s11 = sphi %s4032_s11, %s6593_s11   ;;  %s4000_s10 = sphi %s4030_s10, %s6592_s10   ;;  %s3996_s9 = sphi %s4028_s9, %s6591_s9  }
   0x3   : > { %s63_s14 = ssub.s32 %s4004_s11, %s4043_s13  ;;  %s66_s15 = sadd.s32 1, %s4000_s10 }
   0x4   : > { %p64_p0 = scmp.eq.s32.totalorder %s63_s14, 0  ;;  %p76_p1 = scmp.ne.s32.totalorder %s4000_s10, %s3996_s9 }
   0x5   : > { %p77_p2 = scmp.eq.s32.totalorder %s4041_s12, 1  ;;  %p3685_p3 = scmp.ge.s32.totalorder %s4004_s11, 1 }
   0x6   : > { %s4051_s16 = scalar_select %p64_p0, %s4000_s10, %s66_s15  }
   0x7   : > { %p4053_p4 = por %p77_p2, %p76_p1  ;;  %p112_p5 = scmp.lt.s32.totalorder %s4004_s11, 3 }
   0x9   : > { %p113_p6 = pnand %p3685_p3, %p112_p5 }
   0xb   : > { %116 = sbr.rel (%p113_p6) target bundleno = 622 (0x26e), region = 28 }
  0x12   : > { %v138_v0 = vld [vmem:[%s6239_s1] sm:$0xff]  ;;  %v4006_v1 = vmov 0   ;;  %v139_v2 = vld [vmem:[%s6239_s1 + $0x8] sm:$0xff]  ;;  %s3687_s22 = sshll.u32 %s4041_s12, 3  ;;  %v152_v3 = vlaneseq  ;;  %v6259_v42 = vmov 683565275  }
  0x13   : > { %3917 = vset.pattern.permute.xlu0 %v4006_v1  ;;  %p133_p7 = scmp.lt.s32.totalorder %s3687_s22, 15  ;;  %v6253_v46 = vmov 2475754826   ;;  %v6247_v48 = vmov 2131351028   ;;  %s129_s26 = sand.u32 1, %s3996_s9  }
  0x14   : > { %143 = vperm.xlu0 %3917, %v138_v0   ;;  %v4065_v4 = vshrl.u32 %v152_v3, 7  ;;  %v6244_v50 = vmov 2102212464   ;;  %v6251_v52 = vmov 920167782   ;;  %s3686_s27 = sshll.u32 %s129_s26, 7 }
  0x15   : > { %s6595_s22 = smov (!%p133_p7, %s3687_s22), 15  ;;  %v6249_v59 = vmov 1326507024   ;;  %s6121_s28 = scalar_lea.vmem [#allocation2], %s3686_s27 }
  0x16   : > { %s135_s25 = scalar_lea.vmem %s6238_s0, %s6595_s22  ;;  %v154_v5 = vsub.s32 0, %v4065_v4  ;;  %v158_v6 = vsub.s32 1, %v4065_v4  ;;  %v162_v10 = vsub.s32 2, %v4065_v4  ;;  %v166_v29 = vsub.s32 3, %v4065_v4  ;;  %s3821_s29 = sshll.u32 (%p4053_p4), %s4041_s12, 6 }
  0x17   : > { %v4072_v7 = vld [vmem:[%s135_s25] sm:$0xff]  ;;  %s3586_s4 = scalar_lea.vmem (%p4053_p4), %s6240_s2, %s3821_s29 }
  0x18   : > { %148 = vperm.xlu0 %3917, %v139_v2   ;;  %v4075_v8 = vrot.slane %v4072_v7, %v154_v5  ;;  %v4078_v9 = vrot.slane %v4072_v7, %v158_v6  ;;  %v4092_v14 = vrot.slane %v4072_v7, %v162_v10 }
  0x93   : > { %v4081_v11 = vpop.permute.xlu0 %143 }
  0x94   : > { %v4085_v12 = vmul.f32 %v4075_v8, %v4081_v11  ;;  %v4089_v13 = vmul.f32 %v4078_v9, %v4081_v11  ;;  %v4100_v19 = vmul.f32 %v4092_v14, %v4081_v11 }
  0x96   : > { %6358 = vst [vmem:[#allocation3_spill] sm:$0xff] %v4085_v12  ;;  %6359 = vst [vmem:[#allocation4_spill] sm:$0xff] %v4089_v13  ;;  %v236_v15 = vand.u32 2139095040, %v4085_v12  ;;  %v6243_v16 = vand.u32 2147483647, %v4085_v12  ;;  %v340_v18 = vand.u32 2139095040, %v4089_v13 }
  0x97   : > { %v6242_v17 = vand.u32 2147483647, %v4089_v13  ;;  %v444_v26 = vand.u32 2139095040, %v4100_v19 }
  0x98   : > { %v237_v20 = vshrl.u32 %v236_v15, 23  ;;  %v341_v21 = vshrl.u32 %v340_v18, 23  ;;  %v240_v22 = vand.u32 8388607, %v6243_v16 }
  0x99   : > { %v344_v23 = vand.u32 8388607, %v6242_v17  ;;  %v445_v32 = vshrl.u32 %v444_v26, 23 }
  0x9a   : > { %v3688_v24 = vadd.s32 4294967169, %v237_v20  ;;  %v3692_v25 = vadd.s32 4294967169, %v341_v21  ;;  %v241_v30 = vor.u32 8388608, %v240_v22 }
  0x9b   : > { %v345_v31 = vor.u32 8388608, %v344_v23  ;;  %v3696_v35 = vadd.s32 4294967169, %v445_v32 }
  0x9c   : > { %v243_v27 = vadd.s32 1, %v3688_v24  ;;  %v347_v28 = vadd.s32 1, %v3692_v25  ;;  %v4108_v38 = vshll.u32 %v241_v30, 8 }
  0x9d   : > { %v4112_v40 = vshll.u32 %v345_v31, 8  ;;  %v4115_v45 = vadd.s32 1, %v3696_v35 }
  0x9e   : > { %vm244_vm0 = vcmp.gt.s32.totalorder %v243_v27, 0  ;;  %vm348_vm1 = vcmp.gt.s32.totalorder %v347_v28, 0 }
  0x9f   : > { %v245_v33 = vsel %vm244_vm0, %v243_v27, 0  ;;  %v349_v34 = vsel %vm348_vm1, %v347_v28, 0  ;;  %vm452_vm11 = vcmp.gt.s32.totalorder %v4115_v45, 0 }
  0xa0   : > { %v246_v36 = vshrl.u32 %v245_v33, 5  ;;  %v247_v37 = vand.u32 31, %v245_v33  ;;  %v4110_v39 = vshrl.u32 %v349_v34, 5  ;;  %v351_v44 = vand.u32 31, %v349_v34 }
  0xa2   : > { %v248_v41 = vsub.s32 32, %v247_v37  ;;  %v250_v43 = vshll.u32 %v6259_v42, %v247_v37  ;;  %v253_v47 = vshll.u32 %v6253_v46, %v247_v37  ;;  %v256_v49 = vshll.u32 %v6247_v48, %v247_v37 }
  0xa3   : > { %v259_v51 = vshll.u32 %v6244_v50, %v247_v37  ;;  %v262_v53 = vshll.u32 %v6251_v52, %v247_v37  ;;  %vm265_vm2 = vcmp.lt.s32.totalorder %v246_v36, 1  ;;  %vm266_vm3 = vcmp.lt.s32.totalorder %v246_v36, 2 }
  0xa4   : > { %v251_v54 = vshrl.u32 %v6253_v46, %v248_v41  ;;  %v254_v55 = vshrl.u32 %v6247_v48, %v248_v41  ;;  %v257_v56 = vshrl.u32 %v6244_v50, %v248_v41  ;;  %v249_v57 = vshrl.u32 %v6259_v42, %v248_v41 }
  0xa5   : > { %v260_v58 = vshrl.u32 %v6251_v52, %v248_v41  ;;  %v263_v60 = vshrl.u32 %v6249_v59, %v248_v41  ;;  %v352_v0 = vsub.s32 32, %v351_v44  ;;  %vm267_vm4 = vcmp.lt.s32.totalorder %v246_v36, 3 }
  0xa6   : > { %v252_v61 = vor.u32 %v251_v54, %v250_v43  ;;  %v255_v62 = vor.u32 %v254_v55, %v253_v47  ;;  %v258_v63 = vor.u32 %v257_v56, %v256_v49  ;;  %vm268_vm5 = vcmp.lt.s32.totalorder %v246_v36, 4 }
  0xa7   : > { %v261_v1 = vor.u32 %v260_v58, %v259_v51  ;;  %v264_v2 = vor.u32 %v263_v60, %v262_v53  ;;  %v354_v22 = vshll.u32 %v6259_v42, %v351_v44  ;;  %v355_v25 = vshrl.u32 %v6253_v46, %v352_v0 }
  0xa8   : > { %v269_v5 = vsel %vm265_vm2, %v249_v57, %v252_v61  ;;  %v270_v6 = vsel %vm268_vm5, %v258_v63, 2102212464  ;;  %v273_v10 = vsel %vm265_vm2, %v252_v61, %v255_v62  ;;  %v277_v15 = vsel %vm265_vm2, %v255_v62, %v258_v63 }
  0xa9   : > { %v271_v18 = vsel %vm267_vm4, %v255_v62, %v270_v6  ;;  %v274_v20 = vsel %vm268_vm5, %v261_v1, 920167782  ;;  %v278_v21 = vsel %vm268_vm5, %v264_v2, 1326507024  ;;  %v357_v26 = vshll.u32 %v6253_v46, %v351_v44 }
  0xaa   : > { %v275_v23 = vsel %vm267_vm4, %v258_v63, %v274_v20  ;;  %v279_v24 = vsel %vm267_vm4, %v261_v1, %v278_v21  ;;  %v272_v27 = vsel %vm266_vm3, %v269_v5, %v271_v18  ;;  %v358_v31 = vshrl.u32 %v6247_v48, %v352_v0 }
  0xab   : > { %v276_v28 = vsel %vm266_vm3, %v273_v10, %v275_v23  ;;  %v280_v30 = vsel %vm266_vm3, %v277_v15, %v279_v24  ;;  %v356_v37 = vor.u32 %v355_v25, %v354_v22  ;;  %v360_v43 = vshll.u32 %v6247_v48, %v351_v44 }
  0xac   : > { %v4138_v32 = vmul.u32.u64.low %v4108_v38, %v280_v30  ;;  %v4139_v33 = vmul.u32.u64.high %v4108_v38, %v280_v30, %v4138_v32  ;;  %v4142_v34 = vmul.u32.u64.low %v4108_v38, %v276_v28  ;;  %v4143_v35 = vmul.u32.u64.high %v4108_v38, %v276_v28, %v4142_v34 }
  0xad   : > { %v359_v41 = vor.u32 %v358_v31, %v357_v26  ;;  %v361_v47 = vshrl.u32 %v6244_v50, %v352_v0  ;;  %v353_v36 = vshrl.u32 %v6259_v42, %v352_v0  ;;  %v363_v49 = vshll.u32 %v6244_v50, %v351_v44 }
  0xae   : > { %v364_v51 = vshrl.u32 %v6251_v52, %v352_v0  ;;  %v367_v53 = vshrl.u32 %v6249_v59, %v352_v0  ;;  %v288_v54 = vmul.u32 %v4108_v38, %v272_v27  ;;  %v366_v56 = vshll.u32 %v6251_v52, %v351_v44 }
  0xaf   : > { %v362_v55 = vor.u32 %v361_v47, %v360_v43  ;;  %vm369_vm6 = vcmp.lt.s32.totalorder %v4110_v39, 1  ;;  %vm290_vm7 = vc.u32 %v4139_v33, %v4142_v34  ;;  %v291_v57 = vadd.s32 1, %v4143_v35 }
  0xb0   : > { %v365_v58 = vor.u32 %v364_v51, %v363_v49  ;;  %vm370_vm8 = vcmp.lt.s32.totalorder %v4110_v39, 2  ;;  %v368_v60 = vor.u32 %v367_v53, %v366_v56  ;;  %vm371_vm9 = vcmp.lt.s32.totalorder %v4110_v39, 3 }
  0xb1   : > { %vm372_vm10 = vcmp.lt.s32.totalorder %v4110_v39, 4  ;;  %v377_v61 = vsel %vm369_vm6, %v356_v37, %v359_v41  ;;  %v292_v38 = vsel %vm290_vm7, %v291_v57, %v4143_v35  ;;  %v381_v63 = vsel %vm369_vm6, %v359_v41, %v362_v55 }
  0xb2   : > { %v374_v62 = vsel %vm372_vm10, %v362_v55, 2102212464  ;;  %v378_v44 = vsel %vm372_vm10, %v365_v58, 920167782  ;;  %v293_v0 = vadd.s32 %v292_v38, %v288_v54  ;;  %v373_v1 = vsel %vm369_vm6, %v353_v36, %v356_v37 }
  0xb3   : > { %v379_v2 = vsel %vm371_vm9, %v362_v55, %v378_v44  ;;  %v382_v5 = vsel %vm372_vm10, %v368_v60, 1326507024  ;;  %v375_v6 = vsel %vm371_vm9, %v359_v41, %v374_v62  ;;  %v453_v25 = vsel %vm452_vm11, %v4115_v45, 0 }
  0xb4   : > { %v380_v10 = vsel %vm370_vm8, %v377_v61, %v379_v2  ;;  %v383_v15 = vsel %vm371_vm9, %v365_v58, %v382_v5  ;;  %v294_v22 = vadd.s32 536870912, %v293_v0  ;;  %v376_v26 = vsel %vm370_vm8, %v373_v1, %v375_v6 }
  0xb5   : > { %v384_v18 = vsel %vm370_vm8, %v381_v63, %v383_v15  ;;  %v4168_v20 = vmul.u32.u64.low %v4112_v40, %v380_v10  ;;  %v4169_v21 = vmul.u32.u64.high %v4112_v40, %v380_v10, %v4168_v20  ;;  %v455_v27 = vand.u32 31, %v453_v25 }
  0xb6   : > { %v4173_v23 = vmul.u32.u64.low %v4112_v40, %v384_v18  ;;  %v4174_v24 = vmul.u32.u64.high %v4112_v40, %v384_v18, %v4173_v23  ;;  %v4182_v28 = vrot.slane %v4072_v7, %v166_v29  ;;  %v4185_v31 = vshrl.u32 %v294_v22, 30 }
  0xb7   : > { %v395_v30 = vadd.s32 1, %v4169_v21  ;;  %v392_v32 = vmul.u32 %v4112_v40, %v376_v26  ;;  %v456_v35 = vsub.s32 32, %v455_v27  ;;  %v6241_v39 = vand.u32 2147483647, %v4100_v19 }
  0xb8   : > { %vm394_vm12 = vc.u32 %v4174_v24, %v4168_v20  ;;  %v4194_v37 = vmul.f32 %v4182_v28, %v4081_v11  ;;  %v296_v41 = vshll.u32 %v4185_v31, 30  ;;  %v458_v51 = vshll.u32 %v6259_v42, %v455_v27 }
  0xb9   : > { %v396_v45 = vsel %vm394_vm12, %v395_v30, %v4169_v21  ;;  %v459_v47 = vshrl.u32 %v6253_v46, %v456_v35  ;;  %v462_v40 = vshrl.u32 %v6247_v48, %v456_v35  ;;  %v448_v36 = vand.u32 8388607, %v6241_v39 }
  0xba   : > { %6360 = vst [vmem:[#allocation5_spill] sm:$0xff] %v4194_v37  ;;  %v397_v29 = vadd.s32 %v396_v45, %v392_v32  ;;  %v468_v49 = vshrl.u32 %v6251_v52, %v456_v35  ;;  %v461_v53 = vshll.u32 %v6253_v46, %v455_v27  ;;  %v465_v54 = vshrl.u32 %v6244_v50, %v456_v35 }
  0xbb   : > { %v548_v55 = vand.u32 2139095040, %v4194_v37  ;;  %v454_v57 = vshrl.u32 %v453_v25, 5  ;;  %v467_v58 = vshll.u32 %v6244_v50, %v455_v27  ;;  %v471_v60 = vshrl.u32 %v6249_v59, %v456_v35 }
  0xbc   : > { %v398_v43 = vadd.s32 536870912, %v397_v29  ;;  %v4210_v61 = vsub.s32 %v293_v0, %v296_v41  ;;  %v460_v38 = vor.u32 %v459_v47, %v458_v51  ;;  %v463_v62 = vor.u32 %v462_v40, %v461_v53 }
  0xbd   : > { %v464_v44 = vshll.u32 %v6247_v48, %v455_v27  ;;  %v469_v63 = vor.u32 %v468_v49, %v467_v58  ;;  %v470_v1 = vshll.u32 %v6251_v52, %v455_v27  ;;  %v449_v6 = vor.u32 8388608, %v448_v36 }
  0xbe   : > { %v4206_v56 = vshrl.u32 %v398_v43, 30  ;;  %vm473_vm13 = vcmp.lt.s32.totalorder %v454_v57, 1  ;;  %v299_v15 = vsub.s32 0, %v4210_v61  ;;  %vm476_vm14 = vcmp.lt.s32.totalorder %v454_v57, 4 }
  0xbf   : > { %v466_v2 = vor.u32 %v465_v54, %v464_v44  ;;  %v472_v10 = vor.u32 %v471_v60, %v470_v1  ;;  %v481_v18 = vsel %vm473_vm13, %v460_v38, %v463_v62  ;;  %v549_v0 = vshrl.u32 %v548_v55, 23 }
  0xc0   : > { %v400_v5 = vshll.u32 %v4206_v56, 30  ;;  %vm475_vm15 = vcmp.lt.s32.totalorder %v454_v57, 3  ;;  %v482_v21 = vsel %vm476_vm14, %v469_v63, 920167782  ;;  %v457_v22 = vshrl.u32 %v6259_v42, %v456_v35 }
  0xc1   : > { %vm474_vm0 = vcmp.lt.s32.totalorder %v454_v57, 2  ;;  %v478_v23 = vsel %vm476_vm14, %v466_v2, 2102212464  ;;  %v483_v25 = vsel %vm475_vm15, %v466_v2, %v482_v21  ;;  %v485_v30 = vsel %vm473_vm13, %v463_v62, %v466_v2 }
  0xc2   : > { %v4219_v26 = vsub.s32 %v397_v29, %v400_v5  ;;  %v484_v27 = vsel %vm474_vm0, %v481_v18, %v483_v25  ;;  %v486_v32 = vsel %vm476_vm14, %v472_v10, 1326507024  ;;  %v170_v45 = vsub.s32 4, %v4065_v4 }
  0xc3   : > { %v3689_v41 = vmin.u32 %v299_v15, %v4210_v61  ;;  %v489_v43 = vshll.u32 %v449_v6, 8  ;;  %v3700_v47 = vadd.s32 4294967169, %v549_v0  ;;  %v174_v40 = vsub.s32 5, %v4065_v4 }
  0xc4   : > { %v477_v35 = vsel %vm473_vm13, %v457_v22, %v460_v38  ;;  %v479_v36 = vsel %vm475_vm15, %v463_v62, %v478_v23  ;;  %v487_v29 = vsel %vm475_vm15, %v469_v63, %v486_v32  ;;  %v178_v49 = vsub.s32 6, %v4065_v4 }
  0xc5   : > { %v488_v51 = vsel %vm474_vm0, %v485_v30, %v487_v29  ;;  %v4231_v53 = vmul.u32.u64.low %v489_v43, %v484_v27  ;;  %v4232_v54 = vmul.u32.u64.high %v489_v43, %v484_v27, %v4231_v53  ;;  %v403_v55 = vsub.s32 0, %v4219_v26 }
  0xc6   : > { %v4236_v58 = vmul.u32.u64.low %v489_v43, %v488_v51  ;;  %v4237_v60 = vmul.u32.u64.high %v489_v43, %v488_v51, %v4236_v58  ;;  %v4240_v44 = vand.u32 127, %v152_v3  ;;  %v301_v38 = vclz %v3689_v41 }
  0xc7   : > { %v480_v62 = vsel %vm474_vm0, %v477_v35, %v479_v36  ;;  %v555_v63 = vadd.s32 1, %v3700_v47  ;;  %v182_v1 = vsub.s32 7, %v4065_v4  ;;  %v4245_v2 = vrot.slane %v4072_v7, %v170_v45 }
  0xc8   : > { %6361 = vst [vmem:[#allocation6_spill] sm:$0xff] %v4240_v44  ;;  %v4248_v5 = vrot.slane %v4072_v7, %v174_v40  ;;  %v4251_v6 = vrot.slane %v4072_v7, %v178_v49  ;;  %v499_v10 = vadd.s32 1, %v4232_v54  ;;  %v3693_v3 = vmin.u32 %v403_v55, %v4219_v26 }
  0xc9   : > { %v496_v15 = vmul.u32 %v489_v43, %v480_v62  ;;  %vm498_vm1 = vc.u32 %v4237_v60, %v4231_v53  ;;  %vm556_vm2 = vcmp.gt.s32.totalorder %v555_v63, 0  ;;  %v4258_v4 = vadd.s32 128, %v4240_v44 }
  0xca   : > { %v3690_v57 = vadd.s32 4294967294, %v301_v38  ;;  %v500_v18 = vsel %vm498_vm1, %v499_v10, %v4232_v54  ;;  %v557_v0 = vsel %vm556_vm2, %v555_v63, 0  ;;  %v4262_v21 = vadd.s32 256, %v4240_v44 }
  0xcb   : > { %6362 = vst [vmem:[#allocation7_spill] sm:$0xff] %v4258_v4  ;;  %v4265_v22 = vadd.s32 384, %v4240_v44  ;;  %v501_v23 = vadd.s32 %v500_v18, %v496_v15  ;;  %v559_v25 = vand.u32 31, %v557_v0  ;;  %v4269_v27 = vmul.f32 %v4245_v2, %v4081_v11 }
  0xcc   : > { %6363 = vst [vmem:[#allocation8_spill] sm:$0xff] %v4262_v21  ;;  %v4272_v30 = vadd.s32 512, %v4240_v44  ;;  %v4275_v32 = vadd.s32 640, %v4240_v44  ;;  %v4278_v45 = vadd.s32 768, %v4240_v44  ;;  %v4281_v41 = vrot.slane %v4072_v7, %v182_v1 }
  0xcd   : > { %6364 = vst [vmem:[#allocation9_spill] sm:$0xff] %v4265_v22  ;;  %6365 = vst [vmem:[#allocation10_spill] sm:$0xff] %v4269_v27  ;;  %v405_v43 = vclz %v3693_v3  ;;  %v502_v47 = vadd.s32 536870912, %v501_v23  ;;  %v560_v40 = vsub.s32 32, %v559_v25  ;;  %v4284_v35 = vadd.s32 896, %v4240_v44 }
  0xce   : > { %6366 = vst [vmem:[#allocation11_spill] sm:$0xff] %v4272_v30  ;;  %6367 = vst [vmem:[#allocation12_spill] sm:$0xff] %v4275_v32  ;;  %vm3691_vm3 = vcmp.lt.s32.totalorder %v3690_v57, 0  ;;  %v6246_v7 = vand.u32 2147483647, %v4194_v37  ;;  %v652_v62 = vand.u32 2139095040, %v4269_v27  ;;  %v565_v51 = vshll.u32 %v6253_v46, %v559_v25 }
  0xcf   : > { %6368 = vst [vmem:[#allocation13_spill] sm:$0xff] %v4278_v45  ;;  %6369 = vst [vmem:[#allocation14_spill] sm:$0xff] %v4284_v35  ;;  %v4290_v54 = vshrl.u32 %v502_v47, 30  ;;  %v4297_v63 = vsel %vm3691_vm3, 0, %v3690_v57  ;;  %v3694_v1 = vadd.s32 4294967294, %v405_v43  ;;  %v563_v3 = vshrl.u32 %v6253_v46, %v560_v40 }
  0xd0   : > { %v566_v15 = vshrl.u32 %v6247_v48, %v560_v40  ;;  %v569_v18 = vshrl.u32 %v6244_v50, %v560_v40  ;;  %v571_v47 = vshll.u32 %v6244_v50, %v559_v25  ;;  %v572_v55 = vshrl.u32 %v6251_v52, %v560_v40 }
  0xd1   : > { %v504_v10 = vshll.u32 %v4290_v54, 30  ;;  %v552_v38 = vand.u32 8388607, %v6246_v7  ;;  %v558_v57 = vshrl.u32 %v557_v0, 5  ;;  %v562_v43 = vshll.u32 %v6259_v42, %v559_v25 }
  0xd2   : > { %v568_v49 = vshll.u32 %v6247_v48, %v559_v25  ;;  %v573_v29 = vor.u32 %v572_v55, %v571_v47  ;;  %v575_v36 = vshrl.u32 %v6249_v59, %v560_v40  ;;  %v309_v39 = vsub.s32 4294967266, %v4297_v63 }
  0xd3   : > { %v4305_v58 = vsub.s32 %v501_v23, %v504_v10  ;;  %vm3695_vm4 = vcmp.lt.s32.totalorder %v3694_v1, 0  ;;  %v653_v23 = vshrl.u32 %v652_v62, 23  ;;  %v564_v10 = vor.u32 %v563_v3, %v562_v43 }
  0xd4   : > { %v567_v16 = vor.u32 %v566_v15, %v565_v51  ;;  %v570_v50 = vor.u32 %v569_v18, %v568_v49  ;;  %v574_v0 = vshll.u32 %v6251_v52, %v559_v25  ;;  %v4318_v7 = vmul.f32 %v4248_v5, %v4081_v11 }
  0xd5   : > { %v507_v17 = vsub.s32 0, %v4305_v58  ;;  %vm580_vm5 = vcmp.lt.s32.totalorder %v558_v57, 4  ;;  %v4324_v47 = vmul.f32 %v4251_v6, %v4081_v11  ;;  %v4326_v59 = vsel %vm3695_vm4, 0, %v3694_v1 }
  0xd6   : > { %6370 = vst [vmem:[#allocation15_spill] sm:$0xff] %v4318_v7  ;;  %v576_v62 = vor.u32 %v575_v36, %v574_v0  ;;  %v586_v49 = vsel %vm580_vm5, %v573_v29, 920167782  ;;  %v553_v51 = vor.u32 8388608, %v552_v38  ;;  %vm577_vm6 = vcmp.lt.s32.totalorder %v558_v57, 1 }
  0xd7   : > { %v3697_v55 = vmin.u32 %v507_v17, %v4305_v58  ;;  %6371 = vst [vmem:[#allocation16_spill] sm:$0xff] %v4324_v47  ;;  %vm579_vm7 = vcmp.lt.s32.totalorder %v558_v57, 3  ;;  %v3704_v25 = vadd.s32 4294967169, %v653_v23  ;;  %v305_v3 = vsub.s32 32, %v4297_v63 }
  0xd8   : > { %v310_v15 = vadd.s32 127, %v309_v39  ;;  %v585_v18 = vsel %vm577_vm6, %v564_v10, %v567_v16  ;;  %v587_v17 = vsel %vm579_vm7, %v570_v50, %v586_v49  ;;  %v289_v43 = vadd.s32 %v4142_v34, %v4139_v33  ;;  %v4342_v33 = vpop.permute.xlu0 %148 }
  0xd9   : > { %v413_v1 = vsub.s32 4294967266, %v4326_v59  ;;  %v509_v48 = vclz %v3697_v55  ;;  %vm578_vm8 = vcmp.lt.s32.totalorder %v558_v57, 2  ;;  %v582_v38 = vsel %vm580_vm5, %v570_v50, 2102212464 }
  0xda   : > { %v589_v23 = vsel %vm577_vm6, %v567_v16, %v570_v50  ;;  %v590_v0 = vsel %vm580_vm5, %v576_v62, 1326507024  ;;  %v561_v39 = vshrl.u32 %v6259_v42, %v560_v40  ;;  %v588_v52 = vsel %vm578_vm8, %v585_v18, %v587_v17 }
  0xdb   : > { %v591_v49 = vsel %vm579_vm7, %v573_v29, %v590_v0  ;;  %v659_v46 = vadd.s32 1, %v3704_v25  ;;  %v307_v34 = vshrl.u32 %v289_v43, %v305_v3  ;;  %v311_v55 = vshll.u32 %v310_v15, 23 }
  0xdc   : > { %v592_v36 = vsel %vm578_vm8, %v589_v23, %v591_v49  ;;  %v593_v35 = vshll.u32 %v553_v51, 8  ;;  %v414_v45 = vadd.s32 127, %v413_v1  ;;  %v3698_v32 = vadd.s32 4294967294, %v509_v48 }
  0xdd   : > { %v581_v50 = vsel %vm577_vm6, %v561_v39, %v564_v10  ;;  %v583_v62 = vsel %vm579_vm7, %v567_v16, %v582_v38  ;;  %v4356_v29 = vmul.f32 %v4281_v41, %v4081_v11  ;;  %v4360_v51 = vmul.f32 %v4075_v8, %v4342_v33 }
  0xde   : > { %v4347_v30 = vmul.u32.u64.low %v593_v35, %v592_v36  ;;  %v4348_v40 = vmul.u32.u64.high %v593_v35, %v592_v36, %v4347_v30  ;;  %v4350_v18 = vmul.u32.u64.low %v593_v35, %v588_v52  ;;  %v4351_v17 = vmul.u32.u64.high %v593_v35, %v588_v52, %v4350_v18 }
  0xdf   : > { %6372 = vst [vmem:[#allocation17_spill] sm:$0xff] %v4356_v29  ;;  %6373 = vst [vmem:[#allocation18_spill] sm:$0xff] %v4360_v51  ;;  %v306_v48 = vshll.u32 %v4210_v61, %v4297_v63  ;;  %vm660_vm9 = vcmp.gt.s32.totalorder %v659_v46, 0  ;;  %v4366_v16 = vmul.f32 %v4078_v9, %v4342_v33  ;;  %v4370_v52 = vmul.f32 %v4092_v14, %v4342_v33 }
  0xe0   : > { %v584_v30 = vsel %vm578_vm8, %v581_v50, %v583_v62  ;;  %v661_v11 = vsel %vm660_vm9, %v659_v46, 0  ;;  %v312_v25 = vor.u32 4788187, %v311_v55  ;;  %vm3699_vm10 = vcmp.lt.s32.totalorder %v3698_v32, 0 }
  0xe1   : > { %v308_v10 = vor.u32 %v307_v34, %v306_v48  ;;  %v6374_v8 = vand.u32 2147483647, %v4269_v27  ;;  %v409_v61 = vsub.s32 32, %v4326_v59  ;;  %v415_v63 = vshll.u32 %v414_v45, 23 }
  0xe2   : > { %vm602_vm11 = vc.u32 %v4348_v40, %v4350_v18  ;;  %v603_v9 = vadd.s32 1, %v4351_v17  ;;  %v4381_v14 = vmul.f32 %v4182_v28, %v4342_v33  ;;  %v4385_v46 = vmul.f32 %v4245_v2, %v4342_v33 }
  0xe3   : > { %v656_v3 = vand.u32 8388607, %v6374_v8  ;;  %v600_v57 = vmul.u32 %v593_v35, %v584_v30  ;;  %v663_v15 = vand.u32 31, %v661_v11  ;;  %v4389_v43 = vmul.f32 %v4248_v5, %v4342_v33 }
  0xe4   : > { %v393_v45 = vadd.s32 %v4168_v20, %v4174_v24  ;;  %v4393_v1 = vsel %vm3699_vm10, 0, %v3698_v32  ;;  %v604_v36 = vsel %vm602_vm11, %v603_v9, %v4351_v17  ;;  %v313_v38 = vand.u32 2147483647, %v312_v25 }
  0xe5   : > { %6375 = vst [vmem:[#allocation19_spill] sm:$0xff] %v4389_v43  ;;  %v315_v28 = vcvt.s32.f32 %v308_v10  ;;  %v605_v23 = vadd.s32 %v604_v36, %v600_v57  ;;  %v664_v0 = vsub.s32 32, %v663_v15  ;;  %v410_v2 = vshll.u32 %v4219_v26, %v4326_v59 }
  0xe6   : > { %v411_v35 = vshrl.u32 %v393_v45, %v409_v61  ;;  %v416_v39 = vor.u32 4788187, %v415_v63  ;;  %v657_v49 = vor.u32 8388608, %v656_v3  ;;  %v517_v5 = vsub.s32 4294967266, %v4393_v1 }
  0xe7   : > { %v606_v34 = vadd.s32 536870912, %v605_v23  ;;  %v666_v55 = vshll.u32 %v6259_v42, %v663_v15  ;;  %v6376_v20 = vmov 2475754826   ;;  %v6377_v50 = vmov 2131351028  }
  0xe8   : > { %v667_v24 = vshrl.u32 %v6376_v20, %v664_v0  ;;  %v669_v32 = vshll.u32 %v6376_v20, %v663_v15  ;;  %v670_v62 = vshrl.u32 %v6377_v50, %v664_v0  ;;  %v6378_v17 = vmov 2102212464  }
  0xe9   : > { %v673_v48 = vshrl.u32 %v6378_v17, %v664_v0  ;;  %v6379_v30 = vmov 920167782   ;;  %v4405_v25 = vshrl.u32 %v606_v34, 30  ;;  %v662_v59 = vshrl.u32 %v661_v11, 5 }
  0xea   : > { %v676_v10 = vshrl.u32 %v6379_v30, %v664_v0  ;;  %v672_v26 = vshll.u32 %v6377_v50, %v663_v15  ;;  %v675_v8 = vshll.u32 %v6378_v17, %v663_v15  ;;  %v668_v3 = vor.u32 %v667_v24, %v666_v55 }
  0xeb   : > { %v671_v61 = vor.u32 %v670_v62, %v669_v32  ;;  %v678_v63 = vshll.u32 %v6379_v30, %v663_v15  ;;  %v6380_v9 = vmov 1326507024   ;;  %v4411_v45 = vmul.f32 %v315_v28, %v313_v38 }
  0xec   : > { %v679_v57 = vshrl.u32 %v6380_v9, %v664_v0  ;;  %v319_v36 = vsub.s32 4, %v4185_v31  ;;  %v608_v42 = vshll.u32 %v4405_v25, 30  ;;  %v677_v22 = vor.u32 %v676_v10, %v675_v8 }
  0xed   : > { %v412_v34 = vor.u32 %v411_v35, %v410_v2  ;;  %v497_v11 = vadd.s32 %v4231_v53, %v4237_v60  ;;  %v674_v21 = vor.u32 %v673_v48, %v672_v26  ;;  %v417_v44 = vand.u32 2147483647, %v416_v39 }
  0xee   : > { %v680_v4 = vor.u32 %v679_v57, %v678_v63  ;;  %v4417_v55 = vsub.s32 %v605_v23, %v608_v42  ;;  %vm681_vm12 = vcmp.lt.s32.totalorder %v662_v59, 1  ;;  %v697_v15 = vshll.u32 %v657_v49, 8 }
  0xef   : > { %vm235_vm13 = vcmp.lt.s32.totalorder %v4085_v12, 0  ;;  %v518_v38 = vadd.s32 127, %v517_v5  ;;  %vm684_vm14 = vcmp.lt.s32.totalorder %v662_v59, 4  ;;  %v689_v28 = vsel %vm681_vm12, %v668_v3, %v671_v61 }
  0xf0   : > { %v756_v24 = vand.u32 2139095040, %v4318_v7  ;;  %vm339_vm15 = vcmp.lt.s32.totalorder %v4089_v13, 0  ;;  %v611_v2 = vsub.s32 0, %v4417_v55  ;;  %vm682_vm0 = vcmp.lt.s32.totalorder %v662_v59, 2 }
  0xf1   : > { %vm683_vm1 = vcmp.lt.s32.totalorder %v662_v59, 3  ;;  %v690_v53 = vsel %vm684_vm14, %v677_v22, 920167782  ;;  %v686_v60 = vsel %vm684_vm14, %v674_v21, 2102212464  ;;  %v693_v23 = vsel %vm681_vm12, %v671_v61, %v674_v21 }
  0xf2   : > { %v691_v42 = vsel %vm683_vm1, %v674_v21, %v690_v53  ;;  %v694_v35 = vsel %vm684_vm14, %v680_v4, 1326507024  ;;  %v513_v39 = vsub.s32 32, %v4393_v1  ;;  %v6381_v49 = vmov 683565275  }
  0xf3   : > { %v665_v5 = vshrl.u32 %v6381_v49, %v664_v0  ;;  %v692_v32 = vsel %vm682_vm0, %v689_v28, %v691_v42  ;;  %v695_v62 = vsel %vm683_vm1, %v677_v22, %v694_v35  ;;  %v3701_v48 = vmin.u32 %v611_v2, %v4417_v55 }
  0xf4   : > { %v696_v10 = vsel %vm682_vm0, %v693_v23, %v695_v62  ;;  %v4432_v26 = vmul.u32.u64.low %v697_v15, %v692_v32  ;;  %v4433_v8 = vmul.u32.u64.high %v697_v15, %v692_v32, %v4432_v26  ;;  %v419_v63 = vcvt.s32.f32 %v412_v34 }
  0xf5   : > { %v519_v57 = vshll.u32 %v518_v38, 23  ;;  %v685_v4 = vsel %vm681_vm12, %v665_v5, %v668_v3  ;;  %v687_v21 = vsel %vm683_vm1, %v671_v61, %v686_v60  ;;  %v423_v0 = vsub.s32 4, %v4206_v56 }
  0xf6   : > { %v4439_v53 = vmul.u32.u64.low %v697_v15, %v696_v10  ;;  %v4440_v28 = vmul.u32.u64.high %v697_v15, %v696_v10, %v4439_v53  ;;  %v757_v22 = vshrl.u32 %v756_v24, 23  ;;  %v4444_v2 = vmul.f32 %v4251_v6, %v4342_v33 }
  0xf7   : > { %v6383_v42 = vand.u32 2147483647, %v4085_v12  ;;  %v420_v34 = vmul.f32 %v419_v63, %v417_v44  ;;  %v515_v3 = vshrl.u32 %v497_v11, %v513_v39  ;;  %v613_v38 = vclz %v3701_v48 }
  0xf8   : > { %6382 = vst [vmem:[#allocation20_spill] sm:$0xff] %v4444_v2  ;;  %v688_v61 = vsel %vm682_vm0, %v685_v4, %v687_v21  ;;  %v707_v60 = vadd.s32 1, %v4433_v8  ;;  %v3708_v35 = vadd.s32 4294967169, %v757_v22  ;;  %v317_v24 = vxor.u32 2147483648, %v4411_v45 }
  0xf9   : > { %vm4448_vm2 = vcmp.le.f32.partialorder %v6383_v42, 0.7853982  ;;  %v320_v6 = vsel %vm235_vm13, %v319_v36, %v4185_v31  ;;  %v514_v5 = vshll.u32 %v4305_v58, %v4393_v1  ;;  %v520_v32 = vor.u32 4788187, %v519_v57 }
  0xfa   : > { %v6386_v62 = vand.u32 2147483647, %v4089_v13  ;;  %v424_v59 = vsel %vm339_vm15, %v423_v0, %v4206_v56  ;;  %v527_v11 = vsub.s32 4, %v4290_v54  ;;  %vm706_vm4 = vc.u32 %v4440_v28, %v4432_v26 }
  0xfb   : > { %v421_v31 = vxor.u32 2147483648, %v420_v34  ;;  %vm443_vm5 = vcmp.lt.s32.totalorder %v4100_v19, 0  ;;  %v516_v58 = vor.u32 %v515_v3, %v514_v5  ;;  %v704_v1 = vmul.u32 %v697_v15, %v688_v61 }
  0xfc   : > { %vm4462_vm3 = vcmp.le.f32.partialorder %v6386_v62, 0.7853982  ;;  %v4475_v36 = vsel %vm4448_vm2, 0, %v320_v6  ;;  %v3702_v39 = vadd.s32 4294967294, %v613_v38  ;;  %v708_v48 = vsel %vm706_vm4, %v707_v60, %v4433_v8 }
  0xfd   : > { %6389 = vst [vmem:[#allocation21_spill] sm:$0xff] %v4475_v36  ;;  %v763_v10 = vadd.s32 1, %v3708_v35  ;;  %v318_v56 = vsel %vm235_vm13, %v317_v24, %v4411_v45  ;;  %v4483_v63 = vsel %vm4462_vm3, 0, %v424_v59  ;;  %v521_v57 = vand.u32 2147483647, %v520_v32 }
  0xfe   : > { %6390 = vst [vmem:[#allocation22_spill] sm:$0xff] %v4483_v63  ;;  %v709_v4 = vadd.s32 %v708_v48, %v704_v1  ;;  %v6391_v15 = vand.u32 2147483647, %v4100_v19  ;;  %v528_v8 = vsel %vm443_vm5, %v527_v11, %v4290_v54  ;;  %v860_v0 = vand.u32 2139095040, %v4324_v47 }
  0xff   : > { %vm764_vm7 = vcmp.gt.s32.totalorder %v763_v10, 0  ;;  %v326_v45 = vadd.s32 3, %v4475_v36  ;;  %v422_v53 = vsel %vm339_vm15, %v421_v31, %v420_v34  ;;  %v523_v22 = vcvt.s32.f32 %v516_v58 }
 0x100   : > { %vm4487_vm6 = vcmp.le.f32.partialorder %v6391_v15, 0.7853982  ;;  %v710_v42 = vadd.s32 536870912, %v709_v4  ;;  %v321_v3 = vsel %vm4448_vm2, %v4085_v12, %v318_v56  ;;  %v430_v38 = vadd.s32 3, %v4483_v63 }
 0x101   : > { %vm3703_vm8 = vcmp.lt.s32.totalorder %v3702_v39, 0  ;;  %v765_v61 = vsel %vm764_vm7, %v763_v10, 0  ;;  %v524_v60 = vmul.f32 %v523_v22, %v521_v57  ;;  %v4504_v54 = vsel %vm4487_vm6, 0, %v528_v8 }
 0x102   : > { %6394 = vst [vmem:[#allocation23_spill] sm:$0xff] %v4504_v54  ;;  %v4506_v35 = vshrl.u32 %v710_v42, 30  ;;  %v6265_v24 = vand.u32 2147483647, %v4318_v7  ;;  %v4511_v34 = vmul.f32 %v4281_v41, %v4342_v33  ;;  %v425_v23 = vsel %vm4462_vm3, %v4089_v13, %v422_v53 }
 0x103   : > { %v767_v6 = vand.u32 31, %v765_v61  ;;  %v861_v5 = vshrl.u32 %v860_v0, 23  ;;  %3918 = vcosq.f32 %v321_v3  ;;  %v4516_v32 = vand.u32 3, %v326_v45 }
 0x104   : > { %6395 = vst [vmem:[#allocation24_spill] sm:$0xff] %v4511_v34  ;;  %v4518_v62 = vsel %vm3703_vm8, 0, %v3702_v39  ;;  %v712_v59 = vshll.u32 %v4506_v35, 30  ;;  %3920 = vsinq.f32 %v321_v3  ;;  %v4521_v11 = vand.u32 3, %v430_v38 }
 0x105   : > { %v534_v31 = vadd.s32 3, %v4504_v54  ;;  %v768_v41 = vsub.s32 32, %v767_v6  ;;  %3922 = vcosq.f32 %v425_v23  ;;  %v525_v33 = vxor.u32 2147483648, %v524_v60 }
 0x106   : > { %v4524_v58 = vsub.s32 %v709_v4, %v712_v59  ;;  %v760_v44 = vand.u32 8388607, %v6265_v24  ;;  %v621_v1 = vsub.s32 4294967266, %v4518_v62  ;;  %v3712_v10 = vadd.s32 4294967169, %v861_v5 }
 0x107   : > { %v771_v39 = vshrl.u32 %v6376_v20, %v768_v41  ;;  %v774_v48 = vshrl.u32 %v6377_v50, %v768_v41  ;;  %v770_v57 = vshll.u32 %v6381_v49, %v767_v6  ;;  %v773_v15 = vshll.u32 %v6376_v20, %v767_v6 }
 0x108   : > { %v715_v56 = vsub.s32 0, %v4524_v58  ;;  %v777_v8 = vshrl.u32 %v6378_v17, %v768_v41  ;;  %v766_v4 = vshrl.u32 %v765_v61, 5  ;;  %v776_v0 = vshll.u32 %v6377_v50, %v767_v6 }
 0x109   : > { %v779_v45 = vshll.u32 %v6378_v17, %v767_v6  ;;  %v780_v53 = vshrl.u32 %v6379_v30, %v768_v41  ;;  %v4538_v22 = vand.u32 3, %v534_v31  ;;  %v772_v3 = vor.u32 %v771_v39, %v770_v57 }
 0x10a   : > { %v3705_v42 = vmin.u32 %v715_v56, %v4524_v58  ;;  %v775_v38 = vor.u32 %v774_v48, %v773_v15  ;;  %v778_v5 = vor.u32 %v777_v8, %v776_v0  ;;  %v782_v24 = vshll.u32 %v6379_v30, %v767_v6 }
 0x10b   : > { %v781_v59 = vor.u32 %v780_v53, %v779_v45  ;;  %v783_v54 = vshrl.u32 %v6380_v9, %v768_v41  ;;  %3924 = vsinq.f32 %v425_v23  ;;  %v526_v61 = vsel %vm443_vm5, %v525_v33, %v524_v60 }
 0x10c   : > { %v717_v63 = vclz %v3705_v42  ;;  %v761_v36 = vor.u32 8388608, %v760_v44  ;;  %v622_v34 = vadd.s32 127, %v621_v1  ;;  %vm785_vm9 = vcmp.lt.s32.totalorder %v766_v4, 1 }
 0x10d   : > { %v784_v2 = vor.u32 %v783_v54, %v782_v24  ;;  %v867_v31 = vadd.s32 1, %v3712_v10  ;;  %v4545_v43 = vpop.eup %3918  ;;  %vm787_vm10 = vcmp.lt.s32.totalorder %v766_v4, 3  ;;  %vm788_vm11 = vcmp.lt.s32.totalorder %v766_v4, 4 }
 0x10e   : > { %6396 = vst [vmem:[#allocation25_spill] sm:$0xff] %v4545_v43  ;;  %v3706_v39 = vadd.s32 4294967294, %v717_v63  ;;  %v793_v48 = vsel %vm785_vm9, %v772_v3, %v775_v38  ;;  %v4548_v6 = vpop.eup %3920  ;;  %v790_v56 = vsel %vm788_vm11, %v778_v5, 2102212464  ;;  %v794_v23 = vsel %vm788_vm11, %v781_v59, 920167782 }
 0x10f   : > { %v797_v57 = vsel %vm785_vm9, %v775_v38, %v778_v5  ;;  %v798_v60 = vsel %vm788_vm11, %v784_v2, 1326507024  ;;  %v4551_v33 = vpop.eup %3922  ;;  %vm329_vm12 = vcmp.eq.s32.totalorder %v4516_v32, 0  ;;  %vm332_vm13 = vcmp.eq.s32.totalorder %v4516_v32, 2 }
 0x110   : > { %6397 = vst [vmem:[#allocation26_spill] sm:$0xff] %v4551_v33  ;;  %v769_v54 = vshrl.u32 %v6381_v49, %v768_v41  ;;  %vm786_vm14 = vcmp.lt.s32.totalorder %v766_v4, 2  ;;  %v795_v63 = vsel %vm787_vm10, %v778_v5, %v794_v23  ;;  %v799_v24 = vsel %vm787_vm10, %v781_v59, %v798_v60 }
 0x111   : > { %vm436_vm15 = vcmp.eq.s32.totalorder %v4521_v11, 2  ;;  %v796_v44 = vsel %vm786_vm14, %v793_v48, %v795_v63  ;;  %v800_v1 = vsel %vm786_vm14, %v797_v57, %v799_v24  ;;  %v801_v2 = vshll.u32 %v761_v36, 8 }
 0x112   : > { %v6275_v10 = vand.u32 2147483647, %v4324_v47  ;;  %vm547_vm0 = vcmp.lt.s32.totalorder %v4194_v37, 0  ;;  %v617_v15 = vsub.s32 32, %v4518_v62  ;;  %vm3707_vm1 = vcmp.lt.s32.totalorder %v3706_v39, 0 }
 0x113   : > { %v789_v41 = vsel %vm785_vm9, %v769_v54, %v772_v3  ;;  %v791_v8 = vsel %vm787_vm10, %v775_v38, %v790_v56  ;;  %v4566_v0 = vmul.u32.u64.low %v801_v2, %v800_v1  ;;  %v4567_v45 = vmul.u32.u64.high %v801_v2, %v800_v1, %v4566_v0 }
 0x114   : > { %v4569_v53 = vmul.u32.u64.low %v801_v2, %v796_v44  ;;  %v4570_v42 = vmul.u32.u64.high %v801_v2, %v796_v44, %v4569_v53  ;;  %v6274_v36 = vxor.u32 2147483648, %v4548_v6  ;;  %v6273_v5 = vxor.u32 2147483648, %v4545_v43 }
 0x115   : > { %v623_v59 = vshll.u32 %v622_v34, 23  ;;  %vm868_vm2 = vcmp.gt.s32.totalorder %v867_v31, 0  ;;  %v601_v48 = vadd.s32 %v4350_v18, %v4348_v40  ;;  %v4577_v23 = vsel %vm3707_vm1, 0, %v3706_v39  ;;  %v4580_v56 = vpop.eup %3924 }
 0x116   : > { %v792_v3 = vsel %vm786_vm14, %v789_v41, %v791_v8  ;;  %v869_v38 = vsel %vm868_vm2, %v867_v31, 0  ;;  %v6272_v57 = vxor.u32 2147483648, %v4551_v33  ;;  %v529_v60 = vsel %vm4487_vm6, %v4100_v19, %v526_v61 }
 0x117   : > { %v631_v54 = vsub.s32 4, %v4405_v25  ;;  %v871_v34 = vand.u32 31, %v869_v38  ;;  %v619_v63 = vshrl.u32 %v601_v48, %v617_v15  ;;  %vm810_vm3 = vc.u32 %v4567_v45, %v4569_v53 }
 0x118   : > { %v811_v40 = vadd.s32 1, %v4570_v42  ;;  %v864_v18 = vand.u32 8388607, %v6275_v10  ;;  %v624_v4 = vor.u32 4788187, %v623_v59  ;;  %v725_v31 = vsub.s32 4294967266, %v4577_v23 }
 0x119   : > { %v808_v39 = vmul.u32 %v801_v2, %v792_v3  ;;  %v872_v24 = vsub.s32 32, %v871_v34  ;;  %v4598_v21 = vsel %vm329_vm12, %v4545_v43, %v6274_v36  ;;  %v4605_v61 = vsel %vm332_vm13, %v6273_v5, %v4548_v6 }
 0x11a   : > { %v812_v1 = vsel %vm810_vm3, %v811_v40, %v4570_v42  ;;  %v4614_v2 = vsel %vm436_vm15, %v6272_v57, %v4580_v56  ;;  %3926 = vcosq.f32 %v529_v60  ;;  %v618_v15 = vshll.u32 %v4417_v55, %v4518_v62 }
 0x11b   : > { %v813_v41 = vadd.s32 %v812_v1, %v808_v39  ;;  %v4621_v8 = vsel %vm547_vm0, %v631_v54, %v4405_v25  ;;  %v865_v0 = vor.u32 8388608, %v864_v18  ;;  %v875_v42 = vshrl.u32 %v6376_v20, %v872_v24 }
 0x11c   : > { %v878_v59 = vshrl.u32 %v6377_v50, %v872_v24  ;;  %v620_v48 = vor.u32 %v619_v63, %v618_v15  ;;  %v625_v3 = vand.u32 2147483647, %v624_v4  ;;  %v4625_v40 = vadd.s32 127, %v725_v31 }
 0x11d   : > { %v814_v57 = vadd.s32 536870912, %v813_v41  ;;  %v874_v5 = vshll.u32 %v6381_v49, %v871_v34  ;;  %v877_v55 = vshll.u32 %v6376_v20, %v871_v34  ;;  %v881_v62 = vshrl.u32 %v6378_v17, %v872_v24 }
 0x11e   : > { %v884_v39 = vshrl.u32 %v6379_v30, %v872_v24  ;;  %v4633_v54 = vshrl.u32 %v869_v38, 5  ;;  %v880_v18 = vshll.u32 %v6377_v50, %v871_v34  ;;  %v883_v63 = vshll.u32 %v6378_v17, %v871_v34 }
 0x11f   : > { %v4631_v25 = vshrl.u32 %v814_v57, 30  ;;  %v876_v4 = vor.u32 %v875_v42, %v874_v5  ;;  %v879_v31 = vor.u32 %v878_v59, %v877_v55  ;;  %v886_v1 = vshll.u32 %v6379_v30, %v871_v34 }
 0x120   : > { %v887_v15 = vshrl.u32 %v6380_v9, %v872_v24  ;;  %vm433_vm4 = vcmp.eq.s32.totalorder %v4521_v11, 0  ;;  %3928 = vsinq.f32 %v529_v60  ;;  %v627_v36 = vcvt.s32.f32 %v620_v48 }
 0x121   : > { %v816_v10 = vshll.u32 %v4631_v25, 30  ;;  %v885_v57 = vor.u32 %v884_v39, %v883_v63  ;;  %v6398_v38 = vand.u32 2147483647, %v4194_v37  ;;  %v705_v5 = vadd.s32 %v4432_v26, %v4440_v28 }
 0x122   : > { %v882_v42 = vor.u32 %v881_v62, %v880_v18  ;;  %v888_v34 = vor.u32 %v887_v15, %v886_v1  ;;  %v4649_v59 = vshll.u32 %v865_v0, 8  ;;  %v4651_v55 = vmul.f32 %v627_v36, %v625_v3 }
 0x123   : > { %vm4643_vm5 = vcmp.le.f32.partialorder %v6398_v38, 0.7853982  ;;  %v721_v60 = vsub.s32 32, %v4577_v23  ;;  %v4654_v48 = vsub.s32 %v813_v41, %v816_v10  ;;  %vm889_vm6 = vcmp.lt.s32.totalorder %v4633_v54, 1 }
 0x124   : > { %vm328_vm7 = vcmp.lt.s32.totalorder %v4516_v32, 2  ;;  %v727_v39 = vshll.u32 %v4625_v40, 23  ;;  %vm892_vm8 = vcmp.lt.s32.totalorder %v4633_v54, 4  ;;  %v897_v26 = vsel %vm889_vm6, %v876_v4, %v879_v31  ;;  %v4663_v0 = vpop.eup %3926 }
 0x125   : > { %v964_v28 = vand.u32 2139095040, %v4356_v29  ;;  %6401 = vst [vmem:[#allocation27_spill] sm:$0xff] %v4663_v0  ;;  %vm432_vm9 = vcmp.lt.s32.totalorder %v4521_v11, 2  ;;  %v819_v10 = vsub.s32 0, %v4654_v48  ;;  %vm890_vm10 = vcmp.lt.s32.totalorder %v4633_v54, 2 }
 0x126   : > { %vm891_vm11 = vcmp.lt.s32.totalorder %v4633_v54, 3  ;;  %v898_v36 = vsel %vm892_vm8, %v885_v57, 920167782  ;;  %v894_v41 = vsel %vm892_vm8, %v882_v42, 2102212464  ;;  %v901_v40 = vsel %vm889_vm6, %v879_v31, %v882_v42 }
 0x127   : > { %v899_v3 = vsel %vm891_vm11, %v882_v42, %v898_v36  ;;  %v902_v62 = vsel %vm892_vm8, %v888_v34, 1326507024  ;;  %vm651_vm12 = vcmp.lt.s32.totalorder %v4269_v27, 0  ;;  %v3709_v18 = vmin.u32 %v819_v10, %v4654_v48 }
 0x128   : > { %v873_v63 = vshrl.u32 %v6381_v49, %v872_v24  ;;  %v900_v1 = vsel %vm890_vm10, %v897_v26, %v899_v3  ;;  %v903_v15 = vsel %vm891_vm11, %v885_v57, %v902_v62  ;;  %v965_v42 = vshrl.u32 %v964_v28, 23 }
 0x129   : > { %v904_v38 = vsel %vm890_vm10, %v901_v40, %v903_v15  ;;  %v4683_v36 = vmul.u32.u64.low %v4649_v59, %v900_v1  ;;  %v4684_v43 = vmul.u32.u64.high %v4649_v59, %v900_v1, %v4683_v36  ;;  %vm325_vm13 = vweird.f32 %v4085_v12 }
 0x12a   : > { %v723_v34 = vshrl.u32 %v705_v5, %v721_v60  ;;  %v821_v10 = vclz %v3709_v18  ;;  %v893_v24 = vsel %vm889_vm6, %v873_v63, %v876_v4  ;;  %v895_v26 = vsel %vm891_vm11, %v879_v31, %v894_v41  ;;  %v4708_v31 = vpop.eup %3928 }
 0x12b   : > { %vm429_vm14 = vweird.f32 %v4089_v13  ;;  %v6402_v57 = vxor.u32 2147483648, %v4580_v56  ;;  %v6403_v28 = vand.u32 2147483647, %v4269_v27  ;;  %v3716_v60 = vadd.s32 4294967169, %v965_v42  ;;  %6406 = vst [vmem:[#allocation28_spill] sm:$0xff] %v4708_v31 }
 0x12c   : > { %v4705_v5 = vmul.u32.u64.low %v4649_v59, %v904_v38  ;;  %v4706_v4 = vmul.u32.u64.high %v4649_v59, %v904_v38, %v4705_v5  ;;  %v4713_v41 = vsel %vm4643_vm5, 0, %v4621_v8  ;;  %v722_v62 = vshll.u32 %v4524_v58, %v4577_v23 }
 0x12d   : > { %v435_v3 = vsel %vm433_vm4, %v4551_v33, %v6402_v57  ;;  %vm4700_vm15 = vcmp.le.f32.partialorder %v6403_v28, 0.7853982  ;;  %6407 = vst [vmem:[#allocation29_spill] sm:$0xff] %v4713_v41  ;;  %v728_v18 = vor.u32 4788187, %v727_v39  ;;  %v3710_v63 = vadd.s32 4294967294, %v821_v10 }
 0x12e   : > { %vm537_vm1 = vcmp.eq.s32.totalorder %v4538_v22, 0  ;;  %vm540_vm2 = vcmp.eq.s32.totalorder %v4538_v22, 2  ;;  %v735_v1 = vsub.s32 4, %v4506_v35  ;;  %v896_v15 = vsel %vm890_vm10, %v893_v24, %v895_v26 }
 0x12f   : > { %v915_v38 = vadd.s32 1, %v4684_v43  ;;  %v971_v42 = vadd.s32 1, %v3716_v60  ;;  %v335_v8 = vsel %vm328_vm7, %v4598_v21, %v4605_v61  ;;  %v629_v58 = vxor.u32 2147483648, %v4651_v55 }
 0x130   : > { %v724_v23 = vor.u32 %v723_v34, %v722_v62  ;;  %vm3711_vm3 = vcmp.lt.s32.totalorder %v3710_v63, 0  ;;  %v439_v39 = vsel %vm432_vm9, %v435_v3, %v4614_v2  ;;  %v638_v10 = vadd.s32 3, %v4713_v41 }
 0x131   : > { %vm914_vm4 = vc.u32 %v4706_v4, %v4683_v36  ;;  %v1068_v54 = vand.u32 2139095040, %v4360_v51  ;;  %v6278_v24 = vxor.u32 2147483648, %v4663_v0  ;;  %v729_v26 = vand.u32 2147483647, %v728_v18 }
 0x132   : > { %v824_v32 = vsel %vm3711_vm3, 0, %v3710_v63  ;;  %v912_v21 = vmul.u32 %v4649_v59, %v896_v15  ;;  %v736_v61 = vsel %vm651_vm12, %v735_v1, %v4506_v35  ;;  %v916_v11 = vsel %vm914_vm4, %v915_v38, %v4684_v43 }
 0x133   : > { %v6280_v2 = vand.u32 2147483647, %v4356_v29  ;;  %vm972_vm6 = vcmp.gt.s32.totalorder %v971_v42, 0  ;;  %v6279_v34 = vxor.u32 2147483648, %v4708_v31  ;;  %v630_v57 = vsel %vm547_vm0, %v629_v58, %v4651_v55 }
 0x134   : > { %v731_v3 = vcvt.s32.f32 %v724_v23  ;;  %v917_v28 = vadd.s32 %v916_v11, %v912_v21  ;;  %v4748_v59 = vsel %vm325_vm13, nan, %v335_v8  ;;  %v829_v5 = vsub.s32 4294967266, %v824_v32 }
 0x135   : > { %6408 = vst [vmem:[#allocation30_spill] sm:$0xff] %v4748_v59  ;;  %v973_v60 = vsel %vm972_vm6, %v971_v42, 0  ;;  %v1069_v35 = vshrl.u32 %v1068_v54, 23  ;;  %v4752_v43 = vsel %vm429_vm14, nan, %v439_v39  ;;  %v4756_v18 = vsel %vm4700_vm15, 0, %v736_v61 }
 0x136   : > { %6409 = vst [vmem:[#allocation31_spill] sm:$0xff] %v4752_v43  ;;  %v732_v62 = vmul.f32 %v731_v3, %v729_v26  ;;  %6410 = vst [vmem:[#allocation32_spill] sm:$0xff] %v4756_v18  ;;  %v918_v63 = vadd.s32 536870912, %v917_v28  ;;  %v4761_v55 = vsel %vm4643_vm5, %v4194_v37, %v630_v57  ;;  %v4763_v1 = vand.u32 3, %v638_v10 }
 0x137   : > { %v968_v15 = vand.u32 8388607, %v6280_v2  ;;  %v975_v38 = vand.u32 31, %v973_v60  ;;  %v4772_v42 = vsel %vm537_vm1, %v4663_v0, %v6279_v34  ;;  %v4779_v44 = vsel %vm540_vm2, %v6278_v24, %v4708_v31 }
 0x138   : > { %v825_v8 = vsub.s32 32, %v824_v32  ;;  %v4781_v58 = vshrl.u32 %v918_v63, 30  ;;  %v4784_v23 = vadd.s32 3, %v4756_v18  ;;  %v830_v39 = vadd.s32 127, %v829_v5 }
 0x139   : > { %v976_v10 = vsub.s32 32, %v975_v38  ;;  %v3720_v54 = vadd.s32 4294967169, %v1069_v35  ;;  %3930 = vcosq.f32 %v4761_v55  ;;  %v733_v26 = vxor.u32 2147483648, %v732_v62 }
 0x13a   : > { %v809_v21 = vadd.s32 %v4569_v53, %v4567_v45  ;;  %v920_v61 = vshll.u32 %v4781_v58, 30  ;;  %v826_v11 = vshll.u32 %v4654_v48, %v824_v32  ;;  %v969_v57 = vor.u32 8388608, %v968_v15 }
 0x13b   : > { %v979_v3 = vshrl.u32 %v6376_v20, %v976_v10  ;;  %v982_v63 = vshrl.u32 %v6377_v50, %v976_v10  ;;  %v985_v5 = vshrl.u32 %v6378_v17, %v976_v10  ;;  %v988_v35 = vshrl.u32 %v6379_v30, %v976_v10 }
 0x13c   : > { %v827_v24 = vshrl.u32 %v809_v21, %v825_v8  ;;  %v4793_v34 = vsub.s32 %v917_v28, %v920_v61  ;;  %v831_v2 = vshll.u32 %v830_v39, 23  ;;  %v978_v43 = vshll.u32 %v6381_v49, %v975_v38 }
 0x13d   : > { %v981_v45 = vshll.u32 %v6376_v20, %v975_v38  ;;  %v1075_v53 = vadd.s32 1, %v3720_v54  ;;  %v974_v32 = vshrl.u32 %v973_v60, 5  ;;  %v984_v15 = vshll.u32 %v6377_v50, %v975_v38 }
 0x13e   : > { %v923_v48 = vsub.s32 0, %v4793_v34  ;;  %v987_v59 = vshll.u32 %v6378_v17, %v975_v38  ;;  %vm536_vm0 = vcmp.lt.s32.totalorder %v4538_v22, 2  ;;  %v980_v28 = vor.u32 %v979_v3, %v978_v43 }
 0x13f   : > { %v983_v8 = vor.u32 %v982_v63, %v981_v45  ;;  %v990_v21 = vshll.u32 %v6379_v30, %v975_v38  ;;  %v991_v39 = vshrl.u32 %v6380_v9, %v976_v10  ;;  %v986_v0 = vor.u32 %v985_v5, %v984_v15 }
 0x140   : > { %v3713_v61 = vmin.u32 %v923_v48, %v4793_v34  ;;  %v989_v31 = vor.u32 %v988_v35, %v987_v59  ;;  %v6296_v54 = vand.u32 2147483647, %v4360_v51  ;;  %v734_v60 = vsel %vm651_vm12, %v733_v26, %v732_v62 }
 0x141   : > { %v828_v18 = vor.u32 %v827_v24, %v826_v11  ;;  %v992_v13 = vor.u32 %v991_v39, %v990_v21  ;;  %v1009_v12 = vshll.u32 %v969_v57, 8  ;;  %v832_v41 = vor.u32 4788187, %v831_v2 }
 0x142   : > { %v925_v33 = vclz %v3713_v61  ;;  %vm993_vm5 = vcmp.lt.s32.totalorder %v974_v32, 1  ;;  %vm1076_vm7 = vcmp.gt.s32.totalorder %v1075_v53, 0  ;;  %v977_v43 = vshrl.u32 %v6381_v49, %v976_v10 }
 0x143   : > { %vm995_vm8 = vcmp.lt.s32.totalorder %v974_v32, 3  ;;  %vm996_vm9 = vcmp.lt.s32.totalorder %v974_v32, 4  ;;  %v1001_v38 = vsel %vm993_vm5, %v980_v28, %v983_v8  ;;  %v4811_v3 = vpop.eup %3930  ;;  %v1005_v62 = vsel %vm993_vm5, %v983_v8, %v986_v0 }
 0x144   : > { %v3714_v59 = vadd.s32 4294967294, %v925_v33  ;;  %v998_v63 = vsel %vm996_vm9, %v986_v0, 2102212464  ;;  %v1002_v5 = vsel %vm996_vm9, %v989_v31, 920167782  ;;  %vm994_vm10 = vcmp.lt.s32.totalorder %v974_v32, 2 }
 0x145   : > { %v1003_v24 = vsel %vm995_vm8, %v986_v0, %v1002_v5  ;;  %v1006_v2 = vsel %vm996_vm9, %v992_v13, 1326507024  ;;  %v1077_v26 = vsel %vm1076_vm7, %v1075_v53, 0  ;;  %v997_v11 = vsel %vm993_vm5, %v977_v43, %v980_v28 }
 0x146   : > { %vm3715_vm11 = vcmp.lt.s32.totalorder %v3714_v59, 0  ;;  %v1004_v10 = vsel %vm994_vm10, %v1001_v38, %v1003_v24  ;;  %v1007_v57 = vsel %vm995_vm8, %v989_v31, %v1006_v2  ;;  %v999_v35 = vsel %vm995_vm8, %v983_v8, %v998_v63 }
 0x147   : > { %v1008_v33 = vsel %vm994_vm10, %v1005_v62, %v1007_v57  ;;  %v4820_v45 = vmul.u32.u64.low %v1009_v12, %v1004_v10  ;;  %v4821_v48 = vmul.u32.u64.high %v1009_v12, %v1004_v10, %v4820_v45  ;;  %v4828_v13 = vsel %vm536_vm0, %v4772_v42, %v4779_v44 }
 0x148   : > { %v4830_v0 = vsel %vm3715_vm11, 0, %v3714_v59  ;;  %v1072_v53 = vand.u32 8388607, %v6296_v54  ;;  %v1079_v31 = vand.u32 31, %v1077_v26  ;;  %v737_v15 = vsel %vm4700_vm15, %v4269_v27, %v734_v60 }
 0x149   : > { %v833_v28 = vand.u32 2147483647, %v832_v41  ;;  %v4837_v8 = vmul.u32.u64.low %v1009_v12, %v1008_v33  ;;  %v4838_v21 = vmul.u32.u64.high %v1009_v12, %v1008_v33, %v4837_v8  ;;  %3932 = vsinq.f32 %v4761_v55 }
 0x14a   : > { %v4842_v22 = vand.u32 3, %v4784_v23  ;;  %v1000_v42 = vsel %vm994_vm10, %v997_v11, %v999_v35  ;;  %v1080_v44 = vsub.s32 32, %v1079_v31  ;;  %v6293_v39 = vxor.u32 2147483648, %v4811_v3 }
 0x14b   : > { %v835_v61 = vcvt.s32.f32 %v828_v18  ;;  %v933_v43 = vsub.s32 4294967266, %v4830_v0  ;;  %v1019_v40 = vadd.s32 1, %v4821_v48  ;;  %3934 = vcosq.f32 %v737_v15 }
 0x14c   : > { %vm755_vm12 = vcmp.lt.s32.totalorder %v4318_v7, 0  ;;  %v839_v41 = vsub.s32 4, %v4631_v25  ;;  %v1073_v60 = vor.u32 8388608, %v1072_v53  ;;  %v1083_v55 = vshrl.u32 %v6376_v20, %v1080_v44 }
 0x14d   : > { %v836_v23 = vmul.f32 %v835_v61, %v833_v28  ;;  %v1016_v38 = vmul.u32 %v1009_v12, %v1000_v42  ;;  %vm1018_vm15 = vc.u32 %v4838_v21, %v4820_v45  ;;  %v1086_v32 = vshrl.u32 %v6377_v50, %v1080_v44 }
 0x14e   : > { %v1020_v18 = vsel %vm1018_vm15, %v1019_v40, %v4821_v48  ;;  %v4855_v59 = vshrl.u32 %v1077_v26, 5  ;;  %v1082_v63 = vshll.u32 %v6381_v49, %v1079_v31  ;;  %v1085_v5 = vshll.u32 %v6376_v20, %v1079_v31 }
 0x14f   : > { %v6411_v62 = vand.u32 2147483647, %v4318_v7  ;;  %v934_v12 = vadd.s32 127, %v933_v43  ;;  %v1021_v2 = vadd.s32 %v1020_v18, %v1016_v38  ;;  %v1088_v11 = vshll.u32 %v6377_v50, %v1079_v31 }
 0x150   : > { %v1091_v10 = vshll.u32 %v6378_v17, %v1079_v31  ;;  %v1084_v57 = vor.u32 %v1083_v55, %v1082_v63  ;;  %v1087_v35 = vor.u32 %v1086_v32, %v1085_v5  ;;  %v1089_v26 = vshrl.u32 %v6378_v17, %v1080_v44 }
 0x151   : > { %vm4861_vm1 = vcmp.le.f32.partialorder %v6411_v62, 0.7853982  ;;  %v1092_v33 = vshrl.u32 %v6379_v30, %v1080_v44  ;;  %3936 = vsinq.f32 %v737_v15  ;;  %v837_v48 = vxor.u32 2147483648, %v836_v23 }
 0x152   : > { %v1022_v53 = vadd.s32 536870912, %v1021_v2  ;;  %v1095_v28 = vshrl.u32 %v6380_v9, %v1080_v44  ;;  %v929_v8 = vsub.s32 32, %v4830_v0  ;;  %v1090_v42 = vor.u32 %v1089_v26, %v1088_v11 }
 0x153   : > { %v1093_v61 = vor.u32 %v1092_v33, %v1091_v10  ;;  %v1094_v43 = vshll.u32 %v6379_v30, %v1079_v31  ;;  %vm6353_vm2 = vweird.f32 %v4100_v19  ;;  %v913_v40 = vadd.s32 %v4683_v36, %v4706_v4  ;;  %v4880_v38 = vpop.eup %3932 }
 0x154   : > { %v4875_v55 = vshrl.u32 %v1022_v53, 30  ;;  %vm1097_vm3 = vcmp.lt.s32.totalorder %v4855_v59, 1  ;;  %v4878_v15 = vshll.u32 %v1073_v60, 8  ;;  %v935_v32 = vshll.u32 %v934_v12, 23 }
 0x155   : > { %v1096_v18 = vor.u32 %v1095_v28, %v1094_v43  ;;  %vm1100_vm4 = vcmp.lt.s32.totalorder %v4855_v59, 4  ;;  %v1105_v31 = vsel %vm1097_vm3, %v1084_v57, %v1087_v35  ;;  %vm644_vm6 = vcmp.eq.s32.totalorder %v4763_v1, 2  ;;  %v4892_v63 = vpop.eup %3934 }
 0x156   : > { %v838_v36 = vsel %vm755_vm12, %v837_v48, %v836_v23  ;;  %v1024_v4 = vshll.u32 %v4875_v55, 30  ;;  %vm1099_vm0 = vcmp.lt.s32.totalorder %v4855_v59, 3  ;;  %v1106_v60 = vsel %vm1100_vm4, %v1093_v61, 920167782 }
 0x157   : > { %vm641_vm5 = vcmp.eq.s32.totalorder %v4763_v1, 0  ;;  %v931_v5 = vshrl.u32 %v913_v40, %v929_v8  ;;  %vm1098_vm7 = vcmp.lt.s32.totalorder %v4855_v59, 2  ;;  %v1102_v62 = vsel %vm1100_vm4, %v1090_v42, 2102212464 }
 0x158   : > { %v1107_v23 = vsel %vm1099_vm0, %v1090_v42, %v1106_v60  ;;  %v4900_v12 = vsub.s32 %v1021_v2, %v1024_v4  ;;  %v1081_v11 = vshrl.u32 %v6381_v49, %v1080_v44  ;;  %v1109_v26 = vsel %vm1097_vm3, %v1087_v35, %v1090_v42 }
 0x159   : > { %v1108_v10 = vsel %vm1098_vm7, %v1105_v31, %v1107_v23  ;;  %v4910_v33 = vsel %vm4861_vm1, %v4318_v7, %v838_v36  ;;  %v930_v48 = vshll.u32 %v4793_v34, %v4830_v0  ;;  %v936_v53 = vor.u32 4788187, %v935_v32 }
 0x15a   : > { %v1110_v2 = vsel %vm1100_vm4, %v1096_v18, 1326507024  ;;  %v1027_v44 = vsub.s32 0, %v4900_v12  ;;  %v1101_v28 = vsel %vm1097_vm3, %v1081_v11, %v1084_v57  ;;  %v1103_v8 = vsel %vm1099_vm0, %v1087_v35, %v1102_v62 }
 0x15b   : > { %v1111_v42 = vsel %vm1099_vm0, %v1093_v61, %v1110_v2  ;;  %vm640_vm8 = vcmp.lt.s32.totalorder %v4763_v1, 2  ;;  %v932_v43 = vor.u32 %v931_v5, %v930_v48  ;;  %v4931_v32 = vpop.eup %3936  ;;  %v6294_v57 = vxor.u32 2147483648, %v4880_v38 }
 0x15c   : > { %v1112_v34 = vsel %vm1098_vm7, %v1109_v26, %v1111_v42  ;;  %v4927_v0 = vmul.u32.u64.low %v4878_v15, %v1108_v10  ;;  %v4928_v40 = vmul.u32.u64.high %v4878_v15, %v1108_v10, %v4927_v0  ;;  %v3717_v35 = vmin.u32 %v1027_v44, %v4900_v12 }
 0x15d   : > { %v4936_v18 = vmul.u32.u64.low %v4878_v15, %v1112_v34  ;;  %v4937_v61 = vmul.u32.u64.high %v4878_v15, %v1112_v34, %v4936_v18  ;;  %v4942_v31 = vsel %vm6353_vm2, nan, %v4828_v13  ;;  %v937_v36 = vand.u32 2147483647, %v936_v53 }
 0x15e   : > { %6414 = vst [vmem:[#allocation33_spill] sm:$0xff] %v4942_v31  ;;  %v1104_v4 = vsel %vm1098_vm7, %v1101_v28, %v1103_v8  ;;  %v1172_v60 = vand.u32 2139095040, %v4366_v16  ;;  %vm745_vm9 = vcmp.eq.s32.totalorder %v4842_v22, 0  ;;  %v840_v5 = vsel %vm755_vm12, %v839_v41, %v4631_v25 }
 0x15f   : > { %3938 = vcosq.f32 %v4910_v33  ;;  %vm859_vm10 = vcmp.lt.s32.totalorder %v4324_v47, 0  ;;  %v1029_v13 = vclz %v3717_v35  ;;  %vm6352_vm11 = vweird.f32 %v4194_v37 }
 0x160   : > { %v646_v59 = vsel %vm644_vm6, %v6293_v39, %v4880_v38  ;;  %v939_v62 = vcvt.s32.f32 %v932_v43  ;;  %v1123_v23 = vadd.s32 1, %v4928_v40  ;;  %v1173_v11 = vshrl.u32 %v1172_v60, 23 }
 0x161   : > { %v643_v25 = vsel %vm641_vm5, %v4811_v3, %v6294_v57  ;;  %v3718_v41 = vadd.s32 4294967294, %v1029_v13  ;;  %v1120_v10 = vmul.u32 %v4878_v15, %v1104_v4  ;;  %vm1122_vm12 = vc.u32 %v4937_v61, %v4927_v0 }
 0x162   : > { %v4972_v26 = vsel %vm4861_vm1, 0, %v840_v5  ;;  %v6415_v48 = vand.u32 2147483647, %v4324_v47  ;;  %v940_v2 = vmul.f32 %v939_v62, %v937_v36  ;;  %v1124_v44 = vsel %vm1122_vm12, %v1123_v23, %v4928_v40 }
 0x163   : > { %v3724_v28 = vadd.s32 4294967169, %v1173_v11  ;;  %v6292_v8 = vxor.u32 2147483648, %v4931_v32  ;;  %v6291_v15 = vxor.u32 2147483648, %v4892_v63  ;;  %vm3719_vm3 = vcmp.lt.s32.totalorder %v3718_v41, 0 }
 0x164   : > { %vm4976_vm15 = vcmp.le.f32.partialorder %v6415_v48, 0.7853982  ;;  %v1125_v42 = vadd.s32 %v1124_v44, %v1120_v10  ;;  %vm748_vm4 = vcmp.eq.s32.totalorder %v4842_v22, 2  ;;  %v943_v24 = vsub.s32 4, %v4781_v58 }
 0x165   : > { %v1032_v43 = vsel %vm3719_vm3, 0, %v3718_v41  ;;  %v1179_v34 = vadd.s32 1, %v3724_v28  ;;  %v647_v35 = vsel %vm640_vm8, %v643_v25, %v646_v59  ;;  %v846_v18 = vadd.s32 3, %v4972_v26 }
 0x166   : > { %v1037_v36 = vsub.s32 4294967266, %v1032_v43  ;;  %v6295_v40 = vand.u32 2147483647, %v4366_v16  ;;  %v941_v4 = vxor.u32 2147483648, %v940_v2  ;;  %v1033_v60 = vsub.s32 32, %v1032_v43 }
 0x167   : > { %v1126_v5 = vadd.s32 536870912, %v1125_v42  ;;  %vm1180_vm1 = vcmp.gt.s32.totalorder %v1179_v34, 0  ;;  %v747_v13 = vsel %vm745_vm9, %v4892_v63, %v6292_v8  ;;  %v750_v1 = vsel %vm748_vm4, %v6291_v15, %v4931_v32 }
 0x168   : > { %v1038_v59 = vadd.s32 127, %v1037_v36  ;;  %v1181_v62 = vsel %vm1180_vm1, %v1179_v34, 0  ;;  %v944_v23 = vsel %vm859_vm10, %v943_v24, %v4781_v58  ;;  %v1017_v11 = vadd.s32 %v4820_v45, %v4838_v21 }
 0x169   : > { %v5002_v25 = vshrl.u32 %v1126_v5, 30  ;;  %v1183_v41 = vand.u32 31, %v1181_v62  ;;  %v5004_v10 = vpop.eup %3938  ;;  %v5008_v48 = vsel %vm6352_vm11, nan, %v647_v35  ;;  %vm744_vm6 = vcmp.lt.s32.totalorder %v4842_v22, 2 }
 0x16a   : > { %6418 = vst [vmem:[#allocation34_spill] sm:$0xff] %v5008_v48  ;;  %v1039_v44 = vshll.u32 %v1038_v59, 23  ;;  %v1176_v28 = vand.u32 8388607, %v6295_v40  ;;  %v942_v58 = vsel %vm859_vm10, %v941_v4, %v940_v2  ;;  %v1035_v24 = vshrl.u32 %v1017_v11, %v1033_v60 }
 0x16b   : > { %v1128_v45 = vshll.u32 %v5002_v25, 30  ;;  %v1184_v21 = vsub.s32 32, %v1183_v41  ;;  %v5016_v34 = vsel %vm744_vm6, %v747_v13, %v750_v1  ;;  %3940 = vsinq.f32 %v4910_v33 }
 0x16c   : > { %v5019_v36 = vand.u32 3, %v846_v18  ;;  %v5023_v22 = vsel %vm4976_vm15, 0, %v944_v23  ;;  %v6297_v35 = vxor.u32 2147483648, %v5004_v10  ;;  %v1034_v5 = vshll.u32 %v4900_v12, %v1032_v43 }
 0x16d   : > { %v1040_v59 = vor.u32 4788187, %v1039_v44  ;;  %v5027_v2 = vsub.s32 %v1125_v42, %v1128_v45  ;;  %v5032_v4 = vsel %vm4976_vm15, %v4324_v47, %v942_v58  ;;  %v1177_v60 = vor.u32 8388608, %v1176_v28 }
 0x16e   : > { %v1187_v33 = vshrl.u32 %v6376_v20, %v1184_v21  ;;  %v1190_v18 = vshrl.u32 %v6377_v50, %v1184_v21  ;;  %v1036_v13 = vor.u32 %v1035_v24, %v1034_v5  ;;  %v1193_v23 = vshrl.u32 %v6378_v17, %v1184_v21 }
 0x16f   : > { %v1131_v1 = vsub.s32 0, %v5027_v2  ;;  %v1276_v12 = vand.u32 2139095040, %v4370_v52  ;;  %v1186_v42 = vshll.u32 %v6381_v49, %v1183_v41  ;;  %v1189_v43 = vshll.u32 %v6376_v20, %v1183_v41 }
 0x170   : > { %v1195_v53 = vshll.u32 %v6378_v17, %v1183_v41  ;;  %v1196_v11 = vshrl.u32 %v6379_v30, %v1184_v21  ;;  %v1041_v44 = vand.u32 2147483647, %v1040_v59  ;;  %v1182_v58 = vshrl.u32 %v1181_v62, 5 }
 0x171   : > { %v3721_v28 = vmin.u32 %v1131_v1, %v5027_v2  ;;  %v1192_v24 = vshll.u32 %v6377_v50, %v1183_v41  ;;  %vm6351_vm0 = vweird.f32 %v4269_v27  ;;  %v1188_v45 = vor.u32 %v1187_v33, %v1186_v42 }
 0x172   : > { %v1191_v5 = vor.u32 %v1190_v18, %v1189_v43  ;;  %v1197_v15 = vor.u32 %v1196_v11, %v1195_v53  ;;  %v1199_v8 = vshrl.u32 %v6380_v9, %v1184_v21  ;;  %3942 = vcosq.f32 %v5032_v4 }
 0x173   : > { %v1133_v39 = vclz %v3721_v28  ;;  %v1194_v57 = vor.u32 %v1193_v23, %v1192_v24  ;;  %v1198_v40 = vshll.u32 %v6379_v30, %v1183_v41  ;;  %vm963_vm5 = vcmp.lt.s32.totalorder %v4356_v29, 0 }
 0x174   : > { %v1043_v59 = vcvt.s32.f32 %v1036_v13  ;;  %v1185_v62 = vshrl.u32 %v6381_v49, %v1184_v21  ;;  %v5051_v1 = vshll.u32 %v1177_v60, 8  ;;  %v1277_v54 = vshrl.u32 %v1276_v12, 23 }
 0x175   : > { %vm849_vm7 = vcmp.eq.s32.totalorder %v5019_v36, 0  ;;  %vm852_vm8 = vcmp.eq.s32.totalorder %v5019_v36, 2  ;;  %v3722_v33 = vadd.s32 4294967294, %v1133_v39  ;;  %v1200_v18 = vor.u32 %v1199_v8, %v1198_v40  ;;  %v5055_v42 = vpop.eup %3940 }
 0x176   : > { %vm1201_vm9 = vcmp.lt.s32.totalorder %v1182_v58, 1  ;;  %vm1204_vm10 = vcmp.lt.s32.totalorder %v1182_v58, 4  ;;  %v1044_v23 = vmul.f32 %v1043_v59, %v1041_v44  ;;  %vm1203_vm12 = vcmp.lt.s32.totalorder %v1182_v58, 3 }
 0x177   : > { %v1209_v41 = vsel %vm1201_vm9, %v1188_v45, %v1191_v5  ;;  %v1210_v13 = vsel %vm1204_vm10, %v1197_v15, 920167782  ;;  %v6419_v21 = vand.u32 2147483647, %v4356_v29  ;;  %vm3723_vm3 = vcmp.lt.s32.totalorder %v3722_v33, 0 }
 0x178   : > { %vm1202_vm4 = vcmp.lt.s32.totalorder %v1182_v58, 2  ;;  %v1206_v39 = vsel %vm1204_vm10, %v1194_v57, 2102212464  ;;  %v1211_v8 = vsel %vm1203_vm12, %v1194_v57, %v1210_v13  ;;  %v1136_v40 = vsel %vm3723_vm3, 0, %v3722_v33 }
 0x179   : > { %vm5061_vm15 = vcmp.le.f32.partialorder %v6419_v21, 0.7853982  ;;  %v1212_v12 = vsel %vm1202_vm4, %v1209_v41, %v1211_v8  ;;  %v1213_v43 = vsel %vm1201_vm9, %v1191_v5, %v1194_v57  ;;  %v3728_v53 = vadd.s32 4294967169, %v1277_v54 }
 0x17a   : > { %vm848_vm1 = vcmp.lt.s32.totalorder %v5019_v36, 2  ;;  %v6298_v11 = vxor.u32 2147483648, %v5055_v42  ;;  %v1047_v44 = vsub.s32 4, %v4875_v55  ;;  %v1205_v28 = vsel %vm1201_vm9, %v1185_v62, %v1188_v45 }
 0x17b   : > { %v1214_v24 = vsel %vm1204_vm10, %v1200_v18, 1326507024  ;;  %v1207_v59 = vsel %vm1203_vm12, %v1191_v5, %v1206_v39  ;;  %v5077_v33 = vmul.u32.u64.low %v5051_v1, %v1212_v12  ;;  %v5078_v41 = vmul.u32.u64.high %v5051_v1, %v1212_v12, %v5077_v33 }
 0x17c   : > { %v1215_v13 = vsel %vm1203_vm12, %v1197_v15, %v1214_v24  ;;  %v5084_v54 = vsel %vm6351_vm0, nan, %v5016_v34  ;;  %v1045_v57 = vxor.u32 2147483648, %v1044_v23  ;;  %v1141_v21 = vsub.s32 4294967266, %v1136_v40  ;;  %v5092_v39 = vpop.eup %3942 }
 0x17d   : > { %6422 = vst [vmem:[#allocation35_spill] sm:$0xff] %v5084_v54  ;;  %v1216_v45 = vsel %vm1202_vm4, %v1213_v43, %v1215_v13  ;;  %v950_v62 = vadd.s32 3, %v5023_v22  ;;  %v1283_v15 = vadd.s32 1, %v3728_v53  ;;  %6423 = vst [vmem:[#allocation36_spill] sm:$0xff] %v5092_v39  ;;  %v1048_v8 = vsel %vm963_vm5, %v1047_v44, %v4875_v55 }
 0x17e   : > { %v5089_v5 = vmul.u32.u64.low %v5051_v1, %v1216_v45  ;;  %v5090_v18 = vmul.u32.u64.high %v5051_v1, %v1216_v45, %v5089_v5  ;;  %v1137_v12 = vsub.s32 32, %v1136_v40  ;;  %v1208_v34 = vsel %vm1202_vm4, %v1205_v28, %v1207_v59 }
 0x17f   : > { %v6299_v24 = vand.u32 2147483647, %v4370_v52  ;;  %v851_v43 = vsel %vm849_vm7, %v5004_v10, %v6298_v11  ;;  %v854_v53 = vsel %vm852_vm8, %v6297_v35, %v5055_v42  ;;  %v1227_v13 = vadd.s32 1, %v5078_v41 }
 0x180   : > { %vm1284_vm6 = vcmp.gt.s32.totalorder %v1283_v15, 0  ;;  %v1046_v55 = vsel %vm963_vm5, %v1045_v57, %v1044_v23  ;;  %v1121_v58 = vadd.s32 %v4927_v0, %v4937_v61  ;;  %v1142_v44 = vadd.s32 127, %v1141_v21 }
 0x181   : > { %v1285_v28 = vsel %vm1284_vm6, %v1283_v15, 0  ;;  %v5116_v59 = vsel %vm5061_vm15, 0, %v1048_v8  ;;  %v1224_v45 = vmul.u32 %v5051_v1, %v1208_v34  ;;  %vm1226_vm7 = vc.u32 %v5090_v18, %v5077_v33 }
 0x182   : > { %6424 = vst [vmem:[#allocation37_spill] sm:$0xff] %v5116_v59  ;;  %v1287_v5 = vand.u32 31, %v1285_v28  ;;  %v5121_v35 = vand.u32 3, %v950_v62  ;;  %vm1067_vm8 = vcmp.lt.s32.totalorder %v4360_v51, 0  ;;  %v1139_v23 = vshrl.u32 %v1121_v58, %v1137_v12 }
 0x183   : > { %v1228_v57 = vsel %vm1226_vm7, %v1227_v13, %v5078_v41  ;;  %v1280_v0 = vand.u32 8388607, %v6299_v24  ;;  %v5129_v61 = vsel %vm848_vm1, %v851_v43, %v854_v53  ;;  %v1049_v1 = vsel %vm5061_vm15, %v4356_v29, %v1046_v55 }
 0x184   : > { %v1229_v21 = vadd.s32 %v1228_v57, %v1224_v45  ;;  %v1288_v15 = vsub.s32 32, %v1287_v5  ;;  %3944 = vsinq.f32 %v5032_v4  ;;  %v5136_v62 = vadd.s32 3, %v5116_v59 }
 0x185   : > { %v1138_v41 = vshll.u32 %v5027_v2, %v1136_v40  ;;  %v1143_v8 = vshll.u32 %v1142_v44, 23  ;;  %v1151_v36 = vsub.s32 4, %v5002_v25  ;;  %3946 = vcosq.f32 %v1049_v1 }
 0x186   : > { %v1230_v34 = vadd.s32 536870912, %v1229_v21  ;;  %v1291_v43 = vshrl.u32 %v6376_v20, %v1288_v15  ;;  %v1281_v53 = vor.u32 8388608, %v1280_v0  ;;  %v1294_v13 = vshrl.u32 %v6377_v50, %v1288_v15 }
 0x187   : > { %v1140_v60 = vor.u32 %v1139_v23, %v1138_v41  ;;  %v1290_v4 = vshll.u32 %v6381_v49, %v1287_v5  ;;  %v1297_v58 = vshrl.u32 %v6378_v17, %v1288_v15  ;;  %v1380_v2 = vand.u32 2139095040, %v4381_v14 }
 0x188   : > { %v5143_v55 = vshrl.u32 %v1230_v34, 30  ;;  %v1144_v40 = vor.u32 4788187, %v1143_v8  ;;  %v1293_v44 = vshll.u32 %v6376_v20, %v1287_v5  ;;  %v1299_v45 = vshll.u32 %v6378_v17, %v1287_v5 }
 0x189   : > { %v1300_v57 = vshrl.u32 %v6379_v30, %v1288_v15  ;;  %v1286_v0 = vshrl.u32 %v1285_v28, 5  ;;  %v1292_v41 = vor.u32 %v1291_v43, %v1290_v4  ;;  %v1296_v34 = vshll.u32 %v6377_v50, %v1287_v5 }
 0x18a   : > { %v1232_v23 = vshll.u32 %v5143_v55, 30  ;;  %v6425_v11 = vand.u32 2147483647, %v4360_v51  ;;  %v1295_v12 = vor.u32 %v1294_v13, %v1293_v44  ;;  %v1302_v54 = vshll.u32 %v6379_v30, %v1287_v5 }
 0x18b   : > { %v1301_v8 = vor.u32 %v1300_v57, %v1299_v45  ;;  %v1303_v48 = vshrl.u32 %v6380_v9, %v1288_v15  ;;  %vm6318_vm9 = vweird.f32 %v4318_v7  ;;  %3948 = vsinq.f32 %v1049_v1 }
 0x18c   : > { %vm5155_vm5 = vcmp.le.f32.partialorder %v6425_v11, 0.7853982  ;;  %v1152_v28 = vsel %vm1067_vm8, %v1151_v36, %v5002_v25  ;;  %v5165_v43 = vsub.s32 %v1229_v21, %v1232_v23  ;;  %v1298_v4 = vor.u32 %v1297_v58, %v1296_v34 }
 0x18d   : > { %v1147_v11 = vcvt.s32.f32 %v1140_v60  ;;  %v1304_v31 = vor.u32 %v1303_v48, %v1302_v54  ;;  %v5167_v27 = vshll.u32 %v1281_v53, 8  ;;  %v1381_v13 = vshrl.u32 %v1380_v2, 23 }
 0x18e   : > { %v1145_v44 = vand.u32 2147483647, %v1144_v40  ;;  %v1235_v5 = vsub.s32 0, %v5165_v43  ;;  %vm1305_vm10 = vcmp.lt.s32.totalorder %v1286_v0, 1  ;;  %vm1308_vm12 = vcmp.lt.s32.totalorder %v1286_v0, 4  ;;  %v5170_v45 = vpop.eup %3944 }
 0x18f   : > { %vm953_vm15 = vcmp.eq.s32.totalorder %v5121_v35, 0  ;;  %vm956_vm3 = vcmp.eq.s32.totalorder %v5121_v35, 2  ;;  %v1289_v25 = vshrl.u32 %v6381_v49, %v1288_v15  ;;  %vm1307_vm4 = vcmp.lt.s32.totalorder %v1286_v0, 3  ;;  %v5178_v60 = vpop.eup %3946 }
 0x190   : > { %v1313_v1 = vsel %vm1305_vm10, %v1292_v41, %v1295_v12  ;;  %v1314_v48 = vsel %vm1308_vm12, %v1301_v8, 920167782  ;;  %v3725_v54 = vmin.u32 %v1235_v5, %v5165_v43  ;;  %vm1306_vm1 = vcmp.lt.s32.totalorder %v1286_v0, 2  ;;  %6428 = vst [vmem:[#allocation38_spill] sm:$0xff] %v5178_v60 }
 0x191   : > { %v1310_v21 = vsel %vm1308_vm12, %v1298_v4, 2102212464  ;;  %v1315_v36 = vsel %vm1307_vm4, %v1298_v4, %v1314_v48  ;;  %v1317_v58 = vsel %vm1305_vm10, %v1295_v12, %v1298_v4  ;;  %v1318_v2 = vsel %vm1308_vm12, %v1304_v31, 1326507024 }
 0x192   : > { %v1316_v53 = vsel %vm1306_vm1, %v1313_v1, %v1315_v36  ;;  %v3732_v40 = vadd.s32 4294967169, %v1381_v13  ;;  %vm952_vm6 = vcmp.lt.s32.totalorder %v5121_v35, 2  ;;  %v6303_v15 = vxor.u32 2147483648, %v5170_v45 }
 0x193   : > { %v1148_v57 = vmul.f32 %v1147_v11, %v1145_v44  ;;  %v1237_v23 = vclz %v3725_v54  ;;  %v1309_v34 = vsel %vm1305_vm10, %v1289_v25, %v1292_v41  ;;  %v1311_v5 = vsel %vm1307_vm4, %v1295_v12, %v1310_v21 }
 0x194   : > { %v1319_v48 = vsel %vm1307_vm4, %v1301_v8, %v1318_v2  ;;  %v5188_v59 = vmul.u32.u64.low %v5167_v27, %v1316_v53  ;;  %v5189_v37 = vmul.u32.u64.high %v5167_v27, %v1316_v53, %v5188_v59  ;;  %v5194_v31 = vsel %vm5155_vm5, 0, %v1152_v28 }
 0x195   : > { %6429 = vst [vmem:[#allocation39_spill] sm:$0xff] %v5194_v31  ;;  %v3726_v4 = vadd.s32 4294967294, %v1237_v23  ;;  %v1320_v13 = vsel %vm1306_vm1, %v1317_v58, %v1319_v48  ;;  %v1387_v11 = vadd.s32 1, %v3732_v40  ;;  %v5200_v41 = vsel %vm6318_vm9, nan, %v5129_v61  ;;  %v5209_v25 = vpop.eup %3948 }
 0x196   : > { %6430 = vst [vmem:[#allocation40_spill] sm:$0xff] %v5200_v41  ;;  %v5203_v12 = vand.u32 3, %v5136_v62  ;;  %v5206_v8 = vmul.u32.u64.low %v5167_v27, %v1320_v13  ;;  %v5207_v44 = vmul.u32.u64.high %v5167_v27, %v1320_v13, %v5206_v8  ;;  %6431 = vst [vmem:[#allocation41_spill] sm:$0xff] %v5209_v25  ;;  %v1149_v28 = vxor.u32 2147483648, %v1148_v57 }
 0x197   : > { %vm3727_vm7 = vcmp.lt.s32.totalorder %v3726_v4, 0  ;;  %v1312_v1 = vsel %vm1306_vm1, %v1309_v34, %v1311_v5  ;;  %vm1388_vm10 = vcmp.gt.s32.totalorder %v1387_v11, 0  ;;  %v1158_v54 = vadd.s32 3, %v5194_v31 }
 0x198   : > { %v1240_v21 = vsel %vm3727_vm7, 0, %v3726_v4  ;;  %v1331_v61 = vadd.s32 1, %v5189_v37  ;;  %v6305_v36 = vand.u32 2147483647, %v4381_v14  ;;  %v955_v62 = vsel %vm953_vm15, %v5092_v39, %v6303_v15 }
 0x199   : > { %v6432_v53 = vxor.u32 2147483648, %v5092_v39  ;;  %v1245_v58 = vsub.s32 4294967266, %v1240_v21  ;;  %v1389_v2 = vsel %vm1388_vm10, %v1387_v11, 0  ;;  %vm1060_vm12 = vcmp.eq.s32.totalorder %v5203_v12, 2 }
 0x19a   : > { %v6304_v40 = vxor.u32 2147483648, %v5178_v60  ;;  %v1328_v23 = vmul.u32 %v5167_v27, %v1312_v1  ;;  %vm1330_vm4 = vc.u32 %v5207_v44, %v5188_v59  ;;  %v1150_v34 = vsel %vm1067_vm8, %v1149_v28, %v1148_v57 }
 0x19b   : > { %v958_v0 = vsel %vm956_vm3, %v6432_v53, %v5170_v45  ;;  %v1241_v5 = vsub.s32 32, %v1240_v21  ;;  %v1246_v48 = vadd.s32 127, %v1245_v58  ;;  %v1332_v4 = vsel %vm1330_vm4, %v1331_v61, %v5189_v37 }
 0x19c   : > { %v5235_v13 = vsel %vm952_vm6, %v955_v62, %v958_v0  ;;  %v5237_v11 = vand.u32 3, %v1158_v54  ;;  %v1333_v8 = vadd.s32 %v1332_v4, %v1328_v23  ;;  %v1391_v53 = vand.u32 31, %v1389_v2 }
 0x19d   : > { %v1225_v1 = vadd.s32 %v5077_v33, %v5090_v18  ;;  %v1247_v15 = vshll.u32 %v1246_v48, 23  ;;  %v1384_v57 = vand.u32 8388607, %v6305_v36  ;;  %v5249_v37 = vsel %vm1060_vm12, %v6304_v40, %v5209_v25 }
 0x19e   : > { %v1153_v35 = vsel %vm5155_vm5, %v4360_v51, %v1150_v34  ;;  %v1334_v28 = vadd.s32 536870912, %v1333_v8  ;;  %v1392_v54 = vsub.s32 32, %v1391_v53  ;;  %v1242_v61 = vshll.u32 %v5165_v43, %v1240_v21 }
 0x19f   : > { %v1243_v33 = vshrl.u32 %v1225_v1, %v1241_v5  ;;  %v5255_v18 = vshrl.u32 %v1389_v2, 5  ;;  %v1394_v62 = vshll.u32 %v6381_v49, %v1391_v53  ;;  %v1397_v23 = vshll.u32 %v6376_v20, %v1391_v53 }
 0x1a0   : > { %v5258_v0 = vshrl.u32 %v1334_v28, 30  ;;  %v1395_v58 = vshrl.u32 %v6376_v20, %v1392_v54  ;;  %v1398_v48 = vshrl.u32 %v6377_v50, %v1392_v54  ;;  %vm1171_vm8 = vcmp.lt.s32.totalorder %v4366_v16, 0 }
 0x1a1   : > { %v1248_v24 = vor.u32 4788187, %v1247_v15  ;;  %v1401_v34 = vshrl.u32 %v6378_v17, %v1392_v54  ;;  %v1403_v43 = vshll.u32 %v6378_v17, %v1391_v53  ;;  %v1404_v21 = vshrl.u32 %v6379_v30, %v1392_v54 }
 0x1a2   : > { %v1336_v2 = vshll.u32 %v5258_v0, 30  ;;  %v1396_v5 = vor.u32 %v1395_v58, %v1394_v62  ;;  %v1399_v4 = vor.u32 %v1398_v48, %v1397_v23  ;;  %v1400_v1 = vshll.u32 %v6377_v50, %v1391_v53 }
 0x1a3   : > { %vm1057_vm5 = vcmp.eq.s32.totalorder %v5203_v12, 0  ;;  %v1244_v28 = vor.u32 %v1243_v33, %v1242_v61  ;;  %v1405_v40 = vor.u32 %v1404_v21, %v1403_v43  ;;  %v1406_v36 = vshll.u32 %v6379_v30, %v1391_v53 }
 0x1a4   : > { %v1407_v15 = vshrl.u32 %v6380_v9, %v1392_v54  ;;  %vm6317_vm15 = vweird.f32 %v4324_v47  ;;  %3950 = vcosq.f32 %v1153_v35  ;;  %v6433_v27 = vand.u32 2147483647, %v4366_v16 }
 0x1a5   : > { %v1255_v62 = vsub.s32 4, %v5143_v55  ;;  %v5280_v58 = vsub.s32 %v1333_v8, %v1336_v2  ;;  %v1402_v23 = vor.u32 %v1401_v34, %v1400_v1  ;;  %3952 = vsinq.f32 %v1153_v35 }
 0x1a6   : > { %vm5275_vm3 = vcmp.le.f32.partialorder %v6433_v27, 0.7853982  ;;  %v1385_v61 = vor.u32 8388608, %v1384_v57  ;;  %v1408_v33 = vor.u32 %v1407_v15, %v1406_v36  ;;  %vm1409_vm1 = vcmp.lt.s32.totalorder %v5255_v18, 1 }
 0x1a7   : > { %vm1056_vm6 = vcmp.lt.s32.totalorder %v5203_v12, 2  ;;  %v1249_v53 = vand.u32 2147483647, %v1248_v24  ;;  %v1339_v48 = vsub.s32 0, %v5280_v58  ;;  %vm1412_vm7 = vcmp.lt.s32.totalorder %v5255_v18, 4 }
 0x1a8   : > { %v1417_v27 = vsel %vm1409_vm1, %v1396_v5, %v1399_v4  ;;  %v1251_v43 = vcvt.s32.f32 %v1244_v28  ;;  %vm1410_vm10 = vcmp.lt.s32.totalorder %v5255_v18, 2  ;;  %vm1411_vm12 = vcmp.lt.s32.totalorder %v5255_v18, 3 }
 0x1a9   : > { %v1418_v8 = vsel %vm1412_vm7, %v1405_v40, 920167782  ;;  %v3729_v36 = vmin.u32 %v1339_v48, %v5280_v58  ;;  %v1393_v57 = vshrl.u32 %v6381_v49, %v1392_v54  ;;  %v1414_v35 = vsel %vm1412_vm7, %v1402_v23, 2102212464 }
 0x1aa   : > { %v1419_v24 = vsel %vm1411_vm12, %v1402_v23, %v1418_v8  ;;  %vm1275_vm4 = vcmp.lt.s32.totalorder %v4370_v52, 0  ;;  %v1421_v21 = vsel %vm1409_vm1, %v1399_v4, %v1402_v23  ;;  %v1422_v2 = vsel %vm1412_vm7, %v1408_v33, 1326507024 }
 0x1ab   : > { %v1420_v34 = vsel %vm1410_vm10, %v1417_v27, %v1419_v24  ;;  %v1425_v1 = vshll.u32 %v1385_v61, 8  ;;  %v1252_v28 = vmul.f32 %v1251_v43, %v1249_v53  ;;  %v1256_v15 = vsel %vm1171_vm8, %v1255_v62, %v5143_v55 }
 0x1ac   : > { %v1341_v54 = vclz %v3729_v36  ;;  %v1413_v48 = vsel %vm1409_vm1, %v1393_v57, %v1396_v5  ;;  %v1415_v8 = vsel %vm1411_vm12, %v1399_v4, %v1414_v35  ;;  %v1423_v27 = vsel %vm1411_vm12, %v1405_v40, %v1422_v2 }
 0x1ad   : > { %v5308_v24 = vmul.u32.u64.low %v1425_v1, %v1420_v34  ;;  %v5309_v31 = vmul.u32.u64.high %v1425_v1, %v1420_v34, %v5308_v24  ;;  %v6436_v23 = vxor.u32 2147483648, %v5209_v25  ;;  %v6437_v62 = vand.u32 2147483647, %v4370_v52 }
 0x1ae   : > { %v3730_v4 = vadd.s32 4294967294, %v1341_v54  ;;  %v1424_v40 = vsel %vm1410_vm10, %v1421_v21, %v1423_v27  ;;  %v1484_v61 = vand.u32 2139095040, %v4385_v46  ;;  %v5329_v33 = vsel %vm6317_vm15, nan, %v5235_v13  ;;  %v5338_v57 = vpop.eup %3950 }
 0x1af   : > { %v1059_v55 = vsel %vm1057_vm5, %v5178_v60, %v6436_v23  ;;  %vm5319_vm7 = vcmp.le.f32.partialorder %v6437_v62, 0.7853982  ;;  %6440 = vst [vmem:[#allocation42_spill] sm:$0xff] %v5329_v33  ;;  %v5333_v53 = vsel %vm5275_vm3, 0, %v1256_v15  ;;  %6442 = vst [vmem:[#allocation44_spill] sm:$0xff] %v5338_v57  ;;  %vm6316_vm5 = vweird.f32 %v4356_v29  ;;  %v5344_v13 = vpop.eup %3952 }
 0x1b0   : > { %6441 = vst [vmem:[#allocation43_spill] sm:$0xff] %v5333_v53  ;;  %v5335_v43 = vmul.u32.u64.low %v1425_v1, %v1424_v40  ;;  %v5336_v36 = vmul.u32.u64.high %v1425_v1, %v1424_v40, %v5335_v43  ;;  %vm3731_vm1 = vcmp.lt.s32.totalorder %v3730_v4, 0  ;;  %v1359_v35 = vsub.s32 4, %v5258_v0  ;;  %6443 = vst [vmem:[#allocation45_spill] sm:$0xff] %v5344_v13 }
 0x1b1   : > { %v1416_v34 = vsel %vm1410_vm10, %v1413_v48, %v1415_v8  ;;  %v1485_v21 = vshrl.u32 %v1484_v61, 23  ;;  %v1063_v2 = vsel %vm1056_vm6, %v1059_v55, %v5249_v37  ;;  %vm1161_vm12 = vcmp.eq.s32.totalorder %v5237_v11, 0 }
 0x1b2   : > { %v1253_v15 = vxor.u32 2147483648, %v1252_v28  ;;  %v1344_v54 = vsel %vm3731_vm1, 0, %v3730_v4  ;;  %v1435_v27 = vadd.s32 1, %v5309_v31  ;;  %v1262_v23 = vadd.s32 3, %v5333_v53 }
 0x1b3   : > { %v1345_v62 = vsub.s32 32, %v1344_v54  ;;  %v1349_v40 = vsub.s32 4294967266, %v1344_v54  ;;  %v3736_v43 = vadd.s32 4294967169, %v1485_v21  ;;  %v1329_v18 = vadd.s32 %v5188_v59, %v5207_v44  ;;  %v6444_v44 = vld [vmem:[#allocation19_spill] sm:$0xff] }
 0x1b4   : > { %v1432_v48 = vmul.u32 %v1425_v1, %v1416_v34  ;;  %vm1434_vm10 = vc.u32 %v5336_v36, %v5308_v24  ;;  %v1360_v8 = vsel %vm1275_vm4, %v1359_v35, %v5258_v0  ;;  %v6307_v61 = vxor.u32 2147483648, %v5338_v57 }
 0x1b5   : > { %v1350_v37 = vadd.s32 127, %v1349_v40  ;;  %v1436_v55 = vsel %vm1434_vm10, %v1435_v27, %v5309_v31  ;;  %v1491_v4 = vadd.s32 1, %v3736_v43  ;;  %v1254_v21 = vsel %vm1171_vm8, %v1253_v15, %v1252_v28 }
 0x1b6   : > { %v1437_v59 = vadd.s32 %v1436_v55, %v1432_v48  ;;  %v1588_v1 = vand.u32 2139095040, %v6444_v44  ;;  %v6308_v34 = vxor.u32 2147483648, %v5344_v13  ;;  %v1347_v33 = vshrl.u32 %v1329_v18, %v1345_v62 }
 0x1b7   : > { %v1351_v12 = vshll.u32 %v1350_v37, 23  ;;  %vm1492_vm6 = vcmp.gt.s32.totalorder %v1491_v4, 0  ;;  %vm1164_vm1 = vcmp.eq.s32.totalorder %v5237_v11, 2  ;;  %v5369_v0 = vsel %vm5319_vm7, 0, %v1360_v8 }
 0x1b8   : > { %6445 = vst [vmem:[#allocation19_spill] sm:$0xff] %v5369_v0  ;;  %v1438_v31 = vadd.s32 536870912, %v1437_v59  ;;  %v1493_v35 = vsel %vm1492_vm6, %v1491_v4, 0  ;;  %v1257_v28 = vsel %vm5275_vm3, %v4366_v16, %v1254_v21  ;;  %v1346_v15 = vshll.u32 %v5280_v58, %v1344_v54 }
 0x1b9   : > { %v1352_v27 = vor.u32 4788187, %v1351_v12  ;;  %v6446_v40 = vand.u32 2147483647, %v4385_v46  ;;  %v5379_v43 = vsel %vm6316_vm5, nan, %v1063_v2  ;;  %v1495_v48 = vand.u32 31, %v1493_v35 }
 0x1ba   : > { %6447 = vst [vmem:[#allocation46_spill] sm:$0xff] %v5379_v43  ;;  %v5381_v18 = vshrl.u32 %v1438_v31, 30  ;;  %v1589_v37 = vshrl.u32 %v1588_v1, 23  ;;  %v5388_v41 = vsel %vm1161_vm12, %v5338_v57, %v6308_v34  ;;  %v5393_v58 = vsel %vm1164_vm1, %v6307_v61, %v5344_v13 }
 0x1bb   : > { %v1488_v62 = vand.u32 8388607, %v6446_v40  ;;  %v5395_v54 = vand.u32 3, %v1262_v23  ;;  %v1348_v2 = vor.u32 %v1347_v33, %v1346_v15  ;;  %3954 = vcosq.f32 %v1257_v28 }
 0x1bc   : > { %v5398_v12 = vadd.s32 3, %v5369_v0  ;;  %v1440_v8 = vshll.u32 %v5381_v18, 30  ;;  %v1496_v55 = vsub.s32 32, %v1495_v48  ;;  %3956 = vsinq.f32 %v1257_v28 }
 0x1bd   : > { %v1353_v4 = vand.u32 2147483647, %v1352_v27  ;;  %v1489_v21 = vor.u32 8388608, %v1488_v62  ;;  %v1433_v31 = vadd.s32 %v5308_v24, %v5336_v36  ;;  %v3740_v33 = vadd.s32 4294967169, %v1589_v37 }
 0x1be   : > { %v5404_v40 = vsub.s32 %v1437_v59, %v1440_v8  ;;  %v1499_v23 = vshrl.u32 %v6376_v20, %v1496_v55  ;;  %v1355_v15 = vcvt.s32.f32 %v1348_v2  ;;  %v1494_v61 = vshrl.u32 %v1493_v35, 5 }
 0x1bf   : > { %v1502_v34 = vshrl.u32 %v6377_v50, %v1496_v55  ;;  %v1505_v43 = vshrl.u32 %v6378_v17, %v1496_v55  ;;  %v1498_v27 = vshll.u32 %v6381_v49, %v1495_v48  ;;  %v1501_v62 = vshll.u32 %v6376_v20, %v1495_v48 }
 0x1c0   : > { %v1443_v28 = vsub.s32 0, %v5404_v40  ;;  %v1504_v1 = vshll.u32 %v6377_v50, %v1495_v48  ;;  %v1356_v24 = vmul.f32 %v1355_v15, %v1353_v4  ;;  %v1507_v36 = vshll.u32 %v6378_v17, %v1495_v48 }
 0x1c1   : > { %v1508_v59 = vshrl.u32 %v6379_v30, %v1496_v55  ;;  %v5415_v37 = vshll.u32 %v1489_v21, 8  ;;  %v1500_v2 = vor.u32 %v1499_v23, %v1498_v27  ;;  %v1503_v8 = vor.u32 %v1502_v34, %v1501_v62 }
 0x1c2   : > { %v3733_v35 = vmin.u32 %v1443_v28, %v5404_v40  ;;  %v1506_v29 = vor.u32 %v1505_v43, %v1504_v1  ;;  %v1510_v13 = vshll.u32 %v6379_v30, %v1495_v48  ;;  %v1511_v0 = vshrl.u32 %v6380_v9, %v1496_v55 }
 0x1c3   : > { %v1509_v57 = vor.u32 %v1508_v59, %v1507_v36  ;;  %v1595_v47 = vadd.s32 1, %v3740_v33  ;;  %vm1160_vm8 = vcmp.lt.s32.totalorder %v5237_v11, 2  ;;  %v1497_v15 = vshrl.u32 %v6381_v49, %v1496_v55 }
 0x1c4   : > { %v1445_v4 = vclz %v3733_v35  ;;  %vm1513_vm3 = vcmp.lt.s32.totalorder %v1494_v61, 1  ;;  %vm1514_vm12 = vcmp.lt.s32.totalorder %v1494_v61, 2  ;;  %v1357_v21 = vxor.u32 2147483648, %v1356_v24 }
 0x1c5   : > { %vm1379_vm10 = vcmp.lt.s32.totalorder %v4381_v14, 0  ;;  %v1512_v28 = vor.u32 %v1511_v0, %v1510_v13  ;;  %vm1515_vm6 = vcmp.lt.s32.totalorder %v1494_v61, 3  ;;  %vm1516_vm1 = vcmp.lt.s32.totalorder %v1494_v61, 4  ;;  %v5423_v34 = vpop.eup %3954 }
 0x1c6   : > { %6448 = vst [vmem:[#allocation47_spill] sm:$0xff] %v5423_v34  ;;  %v3734_v43 = vadd.s32 4294967294, %v1445_v4  ;;  %v1518_v48 = vsel %vm1516_vm1, %v1506_v29, 2102212464  ;;  %v1521_v1 = vsel %vm1513_vm3, %v1500_v2, %v1503_v8  ;;  %v1522_v23 = vsel %vm1516_vm1, %v1509_v57, 920167782  ;;  %v5426_v33 = vpop.eup %3956 }
 0x1c7   : > { %6449 = vst [vmem:[#allocation48_spill] sm:$0xff] %v5426_v33  ;;  %vm6347_vm5 = vweird.f32 %v4360_v51  ;;  %v1517_v55 = vsel %vm1513_vm3, %v1497_v15, %v1500_v2  ;;  %v1523_v27 = vsel %vm1515_vm6, %v1506_v29, %v1522_v23  ;;  %v1525_v62 = vsel %vm1513_vm3, %v1503_v8, %v1506_v29 }
 0x1c8   : > { %v1526_v13 = vsel %vm1516_vm1, %v1512_v28, 1326507024  ;;  %vm3735_vm15 = vcmp.lt.s32.totalorder %v3734_v43, 0  ;;  %v1519_v0 = vsel %vm1515_vm6, %v1503_v8, %v1518_v48  ;;  %v1524_v36 = vsel %vm1514_vm12, %v1521_v1, %v1523_v27 }
 0x1c9   : > { %v1527_v59 = vsel %vm1515_vm6, %v1509_v57, %v1526_v13  ;;  %v6450_v35 = vand.u32 2147483647, %v4381_v14  ;;  %v1448_v60 = vsel %vm3735_vm15, 0, %v3734_v43  ;;  %v1358_v8 = vsel %vm1275_vm4, %v1357_v21, %v1356_v24 }
 0x1ca   : > { %v1528_v2 = vsel %vm1514_vm12, %v1525_v62, %v1527_v59  ;;  %v5443_v15 = vmul.u32.u64.low %v5415_v37, %v1524_v36  ;;  %v5444_v29 = vmul.u32.u64.high %v5415_v37, %v1524_v36, %v5443_v15  ;;  %v1449_v28 = vsub.s32 32, %v1448_v60 }
 0x1cb   : > { %vm5437_vm9 = vcmp.le.f32.partialorder %v6450_v35, 0.7853982  ;;  %v1453_v48 = vsub.s32 4294967266, %v1448_v60  ;;  %v1463_v57 = vsub.s32 4, %v5381_v18  ;;  %v1520_v1 = vsel %vm1514_vm12, %v1517_v55, %v1519_v0 }
 0x1cc   : > { %v5452_v23 = vmul.u32.u64.low %v5415_v37, %v1528_v2  ;;  %v5453_v27 = vmul.u32.u64.high %v5415_v37, %v1528_v2, %v5452_v23  ;;  %vm1596_vm15 = vcmp.gt.s32.totalorder %v1595_v47, 0  ;;  %v1450_v43 = vshll.u32 %v5404_v40, %v1448_v60 }
 0x1cd   : > { %v1451_v62 = vshrl.u32 %v1433_v31, %v1449_v28  ;;  %v1454_v13 = vadd.s32 127, %v1453_v48  ;;  %v1597_v36 = vsel %vm1596_vm15, %v1595_v47, 0  ;;  %v1167_v24 = vsel %vm1160_vm8, %v5388_v41, %v5393_v58 }
 0x1ce   : > { %v1539_v21 = vadd.s32 1, %v5444_v29  ;;  %v6453_v61 = vand.u32 2147483647, %v6444_v44  ;;  %v1599_v0 = vand.u32 31, %v1597_v36  ;;  %vm1268_vm4 = vcmp.eq.s32.totalorder %v5395_v54, 2 }
 0x1cf   : > { %v1452_v59 = vor.u32 %v1451_v62, %v1450_v43  ;;  %v1455_v35 = vshll.u32 %v1454_v13, 23  ;;  %v1464_v47 = vsel %vm1379_vm10, %v1463_v57, %v5381_v18  ;;  %v1361_v60 = vsel %vm5319_vm7, %v4370_v52, %v1358_v8 }
 0x1d0   : > { %v5463_v55 = vand.u32 8388607, %v6453_v61  ;;  %v1536_v11 = vmul.u32 %v5415_v37, %v1520_v1  ;;  %vm1538_vm8 = vc.u32 %v5453_v27, %v5443_v15  ;;  %v1600_v41 = vsub.s32 32, %v1599_v0 }
 0x1d1   : > { %v5477_v58 = vsel %vm6347_vm5, nan, %v1167_v24  ;;  %vm1265_vm3 = vcmp.eq.s32.totalorder %v5395_v54, 0  ;;  %v5481_v31 = vand.u32 3, %v5398_v12  ;;  %v1456_v18 = vor.u32 4788187, %v1455_v35 }
 0x1d2   : > { %6454 = vst [vmem:[#allocation49_spill] sm:$0xff] %v5477_v58  ;;  %v1540_v40 = vsel %vm1538_vm8, %v1539_v21, %v5444_v29  ;;  %v6321_v37 = vxor.u32 2147483648, %v5423_v34  ;;  %v1593_v8 = vor.u32 8388608, %v5463_v55  ;;  %3958 = vcosq.f32 %v1361_v60 }
 0x1d3   : > { %v1541_v2 = vadd.s32 %v1540_v40, %v1536_v11  ;;  %v1457_v28 = vand.u32 2147483647, %v1456_v18  ;;  %v1459_v48 = vcvt.s32.f32 %v1452_v59  ;;  %v5489_v57 = vsel %vm5437_vm9, 0, %v1464_v47 }
 0x1d4   : > { %6455 = vst [vmem:[#allocation50_spill] sm:$0xff] %v5489_v57  ;;  %3960 = vsinq.f32 %v1361_v60  ;;  %v1603_v1 = vshrl.u32 %v6376_v20, %v1600_v41  ;;  %v1606_v29 = vshrl.u32 %v6377_v50, %v1600_v41  ;;  %v5493_v43 = vshrl.u32 %v1597_v36, 5 }
 0x1d5   : > { %v1542_v12 = vadd.s32 536870912, %v1541_v2  ;;  %v1460_v23 = vmul.f32 %v1459_v48, %v1457_v28  ;;  %v1602_v62 = vshll.u32 %v6381_v49, %v1599_v0  ;;  %v1609_v13 = vshrl.u32 %v6378_v17, %v1600_v41 }
 0x1d6   : > { %v1605_v21 = vshll.u32 %v6376_v20, %v1599_v0  ;;  %v1608_v61 = vshll.u32 %v6377_v50, %v1599_v0  ;;  %v1612_v55 = vshrl.u32 %v6379_v30, %v1600_v41  ;;  %v1611_v35 = vshll.u32 %v6378_v17, %v1599_v0 }
 0x1d7   : > { %v5497_v24 = vshrl.u32 %v1542_v12, 30  ;;  %v1461_v59 = vxor.u32 2147483648, %v1460_v23  ;;  %v1614_v47 = vshll.u32 %v6379_v30, %v1599_v0  ;;  %v1615_v36 = vshrl.u32 %v6380_v9, %v1600_v41 }
 0x1d8   : > { %v1270_v60 = vsel %vm1268_vm4, %v6321_v37, %v5426_v33  ;;  %v1604_v18 = vor.u32 %v1603_v1, %v1602_v62  ;;  %v1607_v40 = vor.u32 %v1606_v29, %v1605_v21  ;;  %v1610_v48 = vor.u32 %v1609_v13, %v1608_v61 }
 0x1d9   : > { %v1544_v11 = vshll.u32 %v5497_v24, 30  ;;  %v1462_v28 = vsel %vm1379_vm10, %v1461_v59, %v1460_v23  ;;  %v1613_v12 = vor.u32 %v1612_v55, %v1611_v35  ;;  %v1616_v5 = vor.u32 %v1615_v36, %v1614_v47 }
 0x1da   : > { %vm1264_vm7 = vcmp.lt.s32.totalorder %v5395_v54, 2  ;;  %v6456_v0 = vxor.u32 2147483648, %v5426_v33  ;;  %v1465_v37 = vsel %vm5437_vm9, %v4381_v14, %v1462_v28  ;;  %v1470_v1 = vadd.s32 3, %v5489_v57 }
 0x1db   : > { %v5523_v29 = vsub.s32 %v1541_v2, %v1544_v11  ;;  %v1601_v23 = vshrl.u32 %v6381_v49, %v1600_v41  ;;  %vm1617_vm12 = vcmp.lt.s32.totalorder %v5493_v43, 1  ;;  %vm1618_vm10 = vcmp.lt.s32.totalorder %v5493_v43, 2 }
 0x1dc   : > { %v1267_v58 = vsel %vm1265_vm3, %v5423_v34, %v6456_v0  ;;  %vm1619_vm6 = vcmp.lt.s32.totalorder %v5493_v43, 3  ;;  %3962 = vcosq.f32 %v1465_v37  ;;  %vm1483_vm1 = vcmp.lt.s32.totalorder %v4385_v46, 0  ;;  %v5534_v2 = vpop.eup %3958  ;;  %v6459_v0 = vld [vmem:[#allocation20_spill] sm:$0xff] }
 0x1dd   : > { %v1547_v62 = vsub.s32 0, %v5523_v29  ;;  %vm1620_vm15 = vcmp.lt.s32.totalorder %v5493_v43, 4  ;;  %v1625_v4 = vsel %vm1617_vm12, %v1604_v18, %v1607_v40  ;;  %6457 = vst [vmem:[#allocation51_spill] sm:$0xff] %v5534_v2  ;;  %v1629_v21 = vsel %vm1617_vm12, %v1607_v40, %v1610_v48 }
 0x1de   : > { %v1622_v13 = vsel %vm1620_vm15, %v1610_v48, 2102212464  ;;  %v1626_v41 = vsel %vm1620_vm15, %v1613_v12, 920167782  ;;  %v1630_v61 = vsel %vm1620_vm15, %v1616_v5, 1326507024  ;;  %v5538_v55 = vpop.eup %3960  ;;  %3964 = vsinq.f32 %v1465_v37 }
 0x1df   : > { %6458 = vst [vmem:[#allocation52_spill] sm:$0xff] %v5538_v55  ;;  %v3737_v59 = vmin.u32 %v1547_v62, %v5523_v29  ;;  %v1627_v35 = vsel %vm1619_vm6, %v1610_v48, %v1626_v41  ;;  %v1631_v47 = vsel %vm1619_vm6, %v1613_v12, %v1630_v61  ;;  %v1633_v28 = vshll.u32 %v1593_v8, 8 }
 0x1e0   : > { %v1628_v36 = vsel %vm1618_vm10, %v1625_v4, %v1627_v35  ;;  %v1632_v11 = vsel %vm1618_vm10, %v1629_v21, %v1631_v47  ;;  %v1692_v5 = vand.u32 2139095040, %v6459_v0  ;;  %vm1369_vm9 = vcmp.eq.s32.totalorder %v5481_v31, 0 }
 0x1e1   : > { %v6460_v37 = vand.u32 2147483647, %v4385_v46  ;;  %v1549_v48 = vclz %v3737_v59  ;;  %v1567_v12 = vsub.s32 4, %v5497_v24  ;;  %v1621_v4 = vsel %vm1617_vm12, %v1601_v23, %v1604_v18 }
 0x1e2   : > { %v1623_v41 = vsel %vm1619_vm6, %v1607_v40, %v1622_v13  ;;  %v5562_v8 = vmul.u32.u64.low %v1633_v28, %v1632_v11  ;;  %v5563_v21 = vmul.u32.u64.high %v1633_v28, %v1632_v11, %v5562_v8  ;;  %vm1372_vm8 = vcmp.eq.s32.totalorder %v5481_v31, 2 }
 0x1e3   : > { %vm5553_vm4 = vcmp.le.f32.partialorder %v6460_v37, 0.7853982  ;;  %v5565_v61 = vmul.u32.u64.low %v1633_v28, %v1628_v36  ;;  %v5566_v35 = vmul.u32.u64.high %v1633_v28, %v1628_v36, %v5565_v61  ;;  %v3738_v47 = vadd.s32 4294967294, %v1549_v48 }
 0x1e4   : > { %v6324_v37 = vand.u32 2147483647, %v6459_v0  ;;  %v1693_v59 = vshrl.u32 %v1692_v5, 23  ;;  %v5572_v57 = vsel %vm1264_vm7, %v1267_v58, %v1270_v60  ;;  %v5575_v23 = vand.u32 3, %v1470_v1 }
 0x1e5   : > { %v1624_v40 = vsel %vm1618_vm10, %v1621_v4, %v1623_v41  ;;  %vm1368_vm3 = vcmp.lt.s32.totalorder %v5481_v31, 2  ;;  %v6323_v13 = vxor.u32 2147483648, %v5538_v55  ;;  %v1537_v36 = vadd.s32 %v5443_v15, %v5453_v27  ;;  %v6464_v41 = vld [vmem:[#allocation24_spill] sm:$0xff] }
 0x1e6   : > { %vm3739_vm12 = vcmp.lt.s32.totalorder %v3738_v47, 0  ;;  %v3744_v11 = vadd.s32 4294967169, %v1693_v59  ;;  %v1568_v54 = vsel %vm1483_vm1, %v1567_v12, %v5497_v24  ;;  %vm1642_vm7 = vc.u32 %v5563_v21, %v5565_v61  ;;  %v5588_v43 = vpop.eup %3962 }
 0x1e7   : > { %v1552_v5 = vsel %vm3739_vm12, 0, %v3738_v47  ;;  %v1643_v58 = vadd.s32 1, %v5566_v35  ;;  %6463 = vst [vmem:[#allocation20_spill] sm:$0xff] %v5588_v43  ;;  %v1640_v48 = vmul.u32 %v1633_v28, %v1624_v40  ;;  %v1696_v4 = vand.u32 8388607, %v6324_v37 }
 0x1e8   : > { %v1553_v60 = vsub.s32 32, %v1552_v5  ;;  %v1557_v1 = vsub.s32 4294967266, %v1552_v5  ;;  %vm1473_vm10 = vcmp.eq.s32.totalorder %v5575_v23, 0  ;;  %v1699_v27 = vadd.s32 1, %v3744_v11  ;;  %v5595_v24 = vpop.eup %3964 }
 0x1e9   : > { %v1644_v15 = vsel %vm1642_vm7, %v1643_v58, %v5566_v35  ;;  %v1796_v8 = vand.u32 2139095040, %v6464_v41  ;;  %6465 = vst [vmem:[#allocation24_spill] sm:$0xff] %v5595_v24  ;;  %v1554_v12 = vshll.u32 %v5523_v29, %v1552_v5  ;;  %v1371_v28 = vsel %vm1369_vm9, %v5534_v2, %v6323_v13 }
 0x1ea   : > { %v1555_v47 = vshrl.u32 %v1537_v36, %v1553_v60  ;;  %v1558_v59 = vadd.s32 127, %v1557_v1  ;;  %v1645_v18 = vadd.s32 %v1644_v15, %v1640_v48  ;;  %v6466_v40 = vxor.u32 2147483648, %v5534_v2 }
 0x1eb   : > { %v5610_v11 = vsel %vm5553_vm4, 0, %v1568_v54  ;;  %vm1700_vm6 = vcmp.gt.s32.totalorder %v1699_v27, 0  ;;  %vm1587_vm15 = vcmp.lt.s32.totalorder %v6444_v44, 0  ;;  %v1697_v58 = vor.u32 8388608, %v1696_v4 }
 0x1ec   : > { %v1374_v35 = vsel %vm1372_vm8, %v6466_v40, %v5538_v55  ;;  %6467 = vst [vmem:[#allocation53_spill] sm:$0xff] %v5610_v11  ;;  %v1556_v29 = vor.u32 %v1555_v47, %v1554_v12  ;;  %v1559_v36 = vshll.u32 %v1558_v59, 23  ;;  %v1646_v5 = vadd.s32 536870912, %v1645_v18 }
 0x1ed   : > { %v6326_v60 = vxor.u32 2147483648, %v5595_v24  ;;  %vm1476_vm9 = vcmp.eq.s32.totalorder %v5575_v23, 2  ;;  %v6332_v1 = vxor.u32 2147483648, %v5588_v43  ;;  %v1701_v48 = vsel %vm1700_vm6, %v1699_v27, 0 }
 0x1ee   : > { %v1560_v15 = vor.u32 4788187, %v1559_v36  ;;  %v1647_v40 = vshrl.u32 %v1646_v5, 30  ;;  %v1797_v54 = vshrl.u32 %v1796_v8, 23  ;;  %v5619_v12 = vsel %vm1368_vm3, %v1371_v28, %v1374_v35 }
 0x1ef   : > { %v5622_v47 = vadd.s32 3, %v5610_v11  ;;  %v6468_v4 = vand.u32 2147483647, %v6444_v44  ;;  %v5631_v27 = vadd.s32 %v5565_v61, %v5563_v21  ;;  %v1703_v36 = vand.u32 31, %v1701_v48 }
 0x1f0   : > { %v1561_v5 = vand.u32 2147483647, %v1560_v15  ;;  %v1563_v37 = vcvt.s32.f32 %v1556_v29  ;;  %v1648_v8 = vshll.u32 %v1647_v40, 30  ;;  %v5633_v13 = vshll.u32 %v1697_v58, 8 }
 0x1f1   : > { %vm5626_vm8 = vcmp.le.f32.partialorder %v6468_v4, 0.7853982  ;;  %v5640_v31 = vsel %vm1473_vm10, %v5588_v43, %v6326_v60  ;;  %v5647_v21 = vsel %vm1476_vm9, %v6332_v1, %v5595_v24  ;;  %v1671_v61 = vsub.s32 4, %v1647_v40 }
 0x1f2   : > { %v1704_v28 = vsub.s32 32, %v1703_v36  ;;  %v1564_v35 = vmul.f32 %v1563_v37, %v1561_v5  ;;  %v5649_v29 = vsub.s32 %v1645_v18, %v1648_v8  ;;  %v3748_v58 = vadd.s32 4294967169, %v1797_v54 }
 0x1f3   : > { %v6471_v15 = vand.u32 2147483647, %v6464_v41  ;;  %v1702_v11 = vshrl.u32 %v1701_v48, 5  ;;  %v1706_v60 = vshll.u32 %v6381_v49, %v1703_v36  ;;  %v1709_v24 = vshll.u32 %v6376_v20, %v1703_v36 }
 0x1f4   : > { %v1707_v51 = vshrl.u32 %v6376_v20, %v1704_v28  ;;  %v1710_v43 = vshrl.u32 %v6377_v50, %v1704_v28  ;;  %v1565_v2 = vxor.u32 2147483648, %v1564_v35  ;;  %v1651_v1 = vsub.s32 0, %v5649_v29 }
 0x1f5   : > { %v5653_v4 = vand.u32 8388607, %v6471_v15  ;;  %v1713_v37 = vshrl.u32 %v6378_v17, %v1704_v28  ;;  %v1672_v18 = vsel %vm1587_vm15, %v1671_v61, %v1647_v40  ;;  %v1712_v54 = vshll.u32 %v6377_v50, %v1703_v36 }
 0x1f6   : > { %v1715_v48 = vshll.u32 %v6378_v17, %v1703_v36  ;;  %v1716_v5 = vshrl.u32 %v6379_v30, %v1704_v28  ;;  %v1566_v8 = vsel %vm1483_vm1, %v1565_v2, %v1564_v35  ;;  %v3741_v15 = vmin.u32 %v1651_v1, %v5649_v29 }
 0x1f7   : > { %v1708_v55 = vor.u32 %v1707_v51, %v1706_v60  ;;  %v1711_v34 = vor.u32 %v1710_v43, %v1709_v24  ;;  %v1714_v33 = vor.u32 %v1713_v37, %v1712_v54  ;;  %v1718_v53 = vshll.u32 %v6379_v30, %v1703_v36 }
 0x1f8   : > { %v1717_v25 = vor.u32 %v1716_v5, %v1715_v48  ;;  %v1719_v7 = vshrl.u32 %v6380_v9, %v1704_v28  ;;  %vm1472_vm3 = vcmp.lt.s32.totalorder %v5575_v23, 2  ;;  %v1653_v40 = vclz %v3741_v15 }
 0x1f9   : > { %v5674_v61 = vsel %vm5626_vm8, 0, %v1672_v18  ;;  %vm1721_vm12 = vcmp.lt.s32.totalorder %v1702_v11, 1  ;;  %v1803_v39 = vadd.s32 1, %v3748_v58  ;;  %v1569_v51 = vsel %vm5553_vm4, %v4385_v46, %v1566_v8 }
 0x1fa   : > { %v1705_v2 = vshrl.u32 %v6381_v49, %v1704_v28  ;;  %v1720_v43 = vor.u32 %v1719_v7, %v1718_v53  ;;  %vm1722_vm1 = vcmp.lt.s32.totalorder %v1702_v11, 2  ;;  %vm6350_vm7 = vweird.f32 %v4366_v16 }
 0x1fb   : > { %vm6349_vm10 = vweird.f32 %v4370_v52  ;;  %v3742_v24 = vadd.s32 4294967294, %v1653_v40  ;;  %vm1723_vm6 = vcmp.lt.s32.totalorder %v1702_v11, 3  ;;  %vm1724_vm9 = vcmp.lt.s32.totalorder %v1702_v11, 4 }
 0x1fc   : > { %v1729_v60 = vsel %vm1721_vm12, %v1708_v55, %v1711_v34  ;;  %v1726_v1 = vsel %vm1724_vm9, %v1714_v33, 2102212464  ;;  %v1730_v36 = vsel %vm1724_vm9, %v1717_v25, 920167782  ;;  %v1733_v35 = vsel %vm1721_vm12, %v1711_v34, %v1714_v33 }
 0x1fd   : > { %v1734_v58 = vsel %vm1724_vm9, %v1720_v43, 1326507024  ;;  %vm6348_vm4 = vweird.f32 %v4381_v14  ;;  %3966 = vcosq.f32 %v1569_v51  ;;  %vm3743_vm5 = vcmp.lt.s32.totalorder %v3742_v24, 0 }
 0x1fe   : > { %v1731_v7 = vsel %vm1723_vm6, %v1714_v33, %v1730_v36  ;;  %v1735_v53 = vsel %vm1723_vm6, %v1717_v25, %v1734_v58  ;;  %3968 = vsinq.f32 %v1569_v51  ;;  %v1656_v62 = vsel %vm3743_vm5, 0, %v3742_v24  ;;  %v6472_v58 = vld [vmem:[#allocation21_spill] sm:$0xff] }
 0x1ff   : > { %v1732_v28 = vsel %vm1722_vm1, %v1729_v60, %v1731_v7  ;;  %v1736_v37 = vsel %vm1722_vm1, %v1733_v35, %v1735_v53  ;;  %v1657_v18 = vsub.s32 32, %v1656_v62  ;;  %v1661_v54 = vsub.s32 4294967266, %v1656_v62 }
 0x200   : > { %v1725_v48 = vsel %vm1721_vm12, %v1705_v2, %v1708_v55  ;;  %v1727_v5 = vsel %vm1723_vm6, %v1711_v34, %v1726_v1  ;;  %v5692_v8 = vmul.u32.u64.low %v5633_v13, %v1736_v37  ;;  %v5693_v15 = vmul.u32.u64.high %v5633_v13, %v1736_v37, %v5692_v8 }
 0x201   : > { %v5696_v33 = vmul.u32.u64.low %v5633_v13, %v1732_v28  ;;  %v5697_v40 = vmul.u32.u64.high %v5633_v13, %v1732_v28, %v5696_v33  ;;  %v1658_v25 = vshll.u32 %v5649_v29, %v1656_v62  ;;  %v1659_v51 = vshrl.u32 %v5631_v27, %v1657_v18 }
 0x202   : > { %v1662_v43 = vadd.s32 127, %v1661_v54  ;;  %vm1804_vm5 = vcmp.gt.s32.totalorder %v1803_v39, 0  ;;  %v1479_v34 = vsel %vm1472_vm3, %v5640_v31, %v5647_v21  ;;  %v1678_v55 = vadd.s32 3, %v5674_v61 }
 0x203   : > { %v1728_v2 = vsel %vm1722_vm1, %v1725_v48, %v1727_v5  ;;  %v1805_v24 = vsel %vm1804_vm5, %v1803_v39, 0  ;;  %v1660_v60 = vor.u32 %v1659_v51, %v1658_v25  ;;  %v1801_v36 = vor.u32 8388608, %v5653_v4  ;;  %v6473_v5 = vld [vmem:[#allocation22_spill] sm:$0xff] }
 0x204   : > { %v1663_v1 = vshll.u32 %v1662_v43, 23  ;;  %v1807_v35 = vand.u32 31, %v1805_v24  ;;  %v5712_v27 = vsel %vm6350_vm7, nan, %v5572_v57  ;;  %v5717_v23 = vsel %vm6349_vm10, nan, %v5619_v12 }
 0x205   : > { %vm1746_vm3 = vc.u32 %v5693_v15, %v5696_v33  ;;  %v1747_v39 = vadd.s32 1, %v5697_v40  ;;  %v5723_v11 = vand.u32 3, %v5622_v47  ;;  %v1744_v21 = vmul.u32 %v5633_v13, %v1728_v2 }
 0x206   : > { %v1664_v31 = vor.u32 4788187, %v1663_v1  ;;  %v1808_v29 = vsub.s32 32, %v1807_v35  ;;  %v5728_v57 = vsel %vm6348_vm4, nan, %v1479_v34  ;;  %v5730_v4 = vand.u32 3, %v1678_v55 }
 0x207   : > { %v1748_v12 = vsel %vm1746_vm3, %v1747_v39, %v5697_v40  ;;  %v5734_v7 = vand.u32 3, %v6472_v58  ;;  %v5736_v53 = vpop.eup %3966  ;;  %v1667_v47 = vcvt.s32.f32 %v1660_v60  ;;  %v5738_v37 = vshll.u32 %v1801_v36, 8 }
 0x208   : > { %v1665_v62 = vand.u32 2147483647, %v1664_v31  ;;  %v1749_v28 = vadd.s32 %v1748_v12, %v1744_v21  ;;  %v5740_v13 = vpop.eup %3968  ;;  %v5742_v18 = vshrl.u32 %v1805_v24, 5  ;;  %v1811_v54 = vshrl.u32 %v6376_v20, %v1808_v29 }
 0x209   : > { %v1814_v48 = vshrl.u32 %v6377_v50, %v1808_v29  ;;  %v5747_v8 = vand.u32 3, %v6473_v5  ;;  %vm1691_vm12 = vcmp.lt.s32.totalorder %v6459_v0, 0  ;;  %v1810_v51 = vshll.u32 %v6381_v49, %v1807_v35 }
 0x20a   : > { %v1668_v40 = vmul.f32 %v1667_v47, %v1665_v62  ;;  %v1750_v25 = vadd.s32 536870912, %v1749_v28  ;;  %v1817_v43 = vshrl.u32 %v6378_v17, %v1808_v29  ;;  %v1581_v34 = vxor.u32 2147483648, %v5736_v53 }
 0x20b   : > { %v1813_v55 = vshll.u32 %v6376_v20, %v1807_v35  ;;  %v1816_v2 = vshll.u32 %v6377_v50, %v1807_v35  ;;  %v1820_v24 = vshrl.u32 %v6379_v30, %v1808_v29  ;;  %v1812_v36 = vor.u32 %v1811_v54, %v1810_v51 }
 0x20c   : > { %v1669_v60 = vxor.u32 2147483648, %v1668_v40  ;;  %v1751_v1 = vshrl.u32 %v1750_v25, 30  ;;  %v1819_v39 = vshll.u32 %v6378_v17, %v1807_v35  ;;  %vm1577_vm1 = vcmp.eq.s32.totalorder %v5723_v11, 0 }
 0x20d   : > { %vm1580_vm6 = vcmp.eq.s32.totalorder %v5723_v11, 2  ;;  %v6474_v31 = vand.u32 2147483647, %v6459_v0  ;;  %v1815_v20 = vor.u32 %v1814_v48, %v1813_v55  ;;  %v1818_v12 = vor.u32 %v1817_v43, %v1816_v2 }
 0x20e   : > { %v1822_v50 = vshll.u32 %v6379_v30, %v1807_v35  ;;  %v1823_v58 = vshrl.u32 %v6380_v9, %v1808_v29  ;;  %v1578_v62 = vxor.u32 2147483648, %v5740_v13  ;;  %v1670_v17 = vsel %vm1587_vm15, %v1669_v60, %v1668_v40 }
 0x20f   : > { %vm5761_vm9 = vcmp.le.f32.partialorder %v6474_v31, 0.7853982  ;;  %v1752_v47 = vshll.u32 %v1751_v1, 30  ;;  %v1821_v54 = vor.u32 %v1820_v24, %v1819_v39  ;;  %vm1992_vm5 = vcmp.eq.s32.totalorder %v5734_v7, 0 }
 0x210   : > { %v1673_v5 = vsel %vm5626_vm8, %v6444_v44, %v1670_v17  ;;  %v1775_v25 = vsub.s32 4, %v1751_v1  ;;  %v1809_v48 = vshrl.u32 %v6381_v49, %v1808_v29  ;;  %v1824_v51 = vor.u32 %v1823_v58, %v1822_v50 }
 0x211   : > { %vm1995_vm3 = vcmp.eq.s32.totalorder %v5734_v7, 2  ;;  %vm1576_vm4 = vcmp.lt.s32.totalorder %v5723_v11, 2  ;;  %3970 = vcosq.f32 %v1673_v5  ;;  %v5777_v30 = vsub.s32 %v1749_v28, %v1752_v47 }
 0x212   : > { %vm1825_vm15 = vcmp.lt.s32.totalorder %v5742_v18, 1  ;;  %vm1828_vm10 = vcmp.lt.s32.totalorder %v5742_v18, 4  ;;  %3972 = vsinq.f32 %v1673_v5  ;;  %vm1826_vm7 = vcmp.lt.s32.totalorder %v5742_v18, 2  ;;  %v6478_v5 = vld [vmem:[#allocation25_spill] sm:$0xff] }
 0x213   : > { %v1830_v9 = vsel %vm1828_vm10, %v1818_v12, 2102212464  ;;  %v1833_v59 = vsel %vm1825_vm15, %v1812_v36, %v1815_v20  ;;  %v1755_v35 = vsub.s32 0, %v5777_v30  ;;  %vm1827_vm8 = vcmp.lt.s32.totalorder %v5742_v18, 3 }
 0x214   : > { %v1829_v49 = vsel %vm1825_vm15, %v1809_v48, %v1812_v36  ;;  %v1834_v29 = vsel %vm1828_vm10, %v1821_v54, 920167782  ;;  %vm1991_vm0 = vcmp.lt.s32.totalorder %v5734_v7, 2  ;;  %v1776_v28 = vsel %vm1691_vm12, %v1775_v25, %v1751_v1 }
 0x215   : > { %v1835_v40 = vsel %vm1827_vm8, %v1818_v12, %v1834_v29  ;;  %v1837_v43 = vsel %vm1825_vm15, %v1815_v20, %v1818_v12  ;;  %v1838_v55 = vsel %vm1828_vm10, %v1824_v51, 1326507024  ;;  %vm1684_vm11 = vcmp.eq.s32.totalorder %v5730_v4, 2 }
 0x216   : > { %v3745_v2 = vmin.u32 %v1755_v35, %v5777_v30  ;;  %v1831_v24 = vsel %vm1827_vm8, %v1815_v20, %v1830_v9  ;;  %v1836_v60 = vsel %vm1826_vm7, %v1833_v59, %v1835_v40  ;;  %v1839_v39 = vsel %vm1827_vm8, %v1821_v54, %v1838_v55 }
 0x217   : > { %vm1681_vm2 = vcmp.eq.s32.totalorder %v5730_v4, 0  ;;  %v1745_v36 = vadd.s32 %v5696_v33, %v5693_v15  ;;  %v1840_v1 = vsel %vm1826_vm7, %v1837_v43, %v1839_v39  ;;  %vm6355_vm10 = vweird.f32 %v4385_v46 }
 0x218   : > { %v5797_v31 = vmul.u32.u64.low %v5738_v37, %v1836_v60  ;;  %v5798_v12 = vmul.u32.u64.high %v5738_v37, %v1836_v60, %v5797_v31  ;;  %v1579_v20 = vsel %vm1577_vm1, %v5736_v53, %v1578_v62  ;;  %v1582_v15 = vsel %vm1580_vm6, %v1581_v34, %v5740_v13 }
 0x219   : > { %v1757_v33 = vclz %v3745_v2  ;;  %v5813_v50 = vsel %vm5761_vm9, 0, %v1776_v28  ;;  %v1832_v58 = vsel %vm1826_vm7, %v1829_v49, %v1831_v24  ;;  %v6477_v54 = vxor.u32 2147483648, %v4548_v6  ;;  %v6481_v49 = vld [vmem:[#allocation26_spill] sm:$0xff] }
 0x21a   : > { %v5818_v17 = vmul.u32.u64.low %v5738_v37, %v1840_v1  ;;  %v5819_v47 = vmul.u32.u64.high %v5738_v37, %v1840_v1, %v5818_v17  ;;  %v6479_v51 = vxor.u32 2147483648, %v6478_v5  ;;  %vm2095_vm1 = vcmp.eq.s32.totalorder %v5747_v8, 0 }
 0x21b   : > { %v1994_v25 = vsel %vm1992_vm5, %v6478_v5, %v6477_v54  ;;  %v3746_v48 = vadd.s32 4294967294, %v1757_v33  ;;  %vm2098_vm7 = vcmp.eq.s32.totalorder %v5747_v8, 2  ;;  %v1583_v18 = vsel %vm1576_vm4, %v1579_v20, %v1582_v15  ;;  %v5842_v43 = vpop.eup %3970  ;;  %v6483_v33 = vld [vmem:[#allocation23_spill] sm:$0xff] }
 0x21c   : > { %v1997_v9 = vsel %vm1995_vm3, %v6479_v51, %v4548_v6  ;;  %v1851_v59 = vadd.s32 1, %v5798_v12  ;;  %v6480_v35 = vxor.u32 2147483648, %v4580_v56  ;;  %v6482_v28 = vxor.u32 2147483648, %v6481_v49  ;;  %v5848_v55 = vpop.eup %3972 }
 0x21d   : > { %vm6354_vm6 = vweird.f32 %v6444_v44  ;;  %vm3747_vm5 = vcmp.lt.s32.totalorder %v3746_v48, 0  ;;  %v1782_v6 = vadd.s32 3, %v5813_v50  ;;  %v1848_v11 = vmul.u32 %v5738_v37, %v1832_v58 }
 0x21e   : > { %v2097_v29 = vsel %vm2095_vm1, %v6481_v49, %v6480_v35  ;;  %v2100_v40 = vsel %vm2098_vm7, %v6482_v28, %v4580_v56  ;;  %vm2094_vm4 = vcmp.lt.s32.totalorder %v5747_v8, 2  ;;  %v1685_v2 = vxor.u32 2147483648, %v5842_v43 }
 0x21f   : > { %v1760_v24 = vsel %vm3747_vm5, 0, %v3746_v48  ;;  %vm1850_vm3 = vc.u32 %v5819_v47, %v5797_v31  ;;  %v1998_v56 = vsel %vm1991_vm0, %v1994_v25, %v1997_v9  ;;  %v1682_v60 = vxor.u32 2147483648, %v5848_v55 }
 0x220   : > { %v1761_v39 = vsub.s32 32, %v1760_v24  ;;  %v1765_v1 = vsub.s32 4294967266, %v1760_v24  ;;  %v2101_v20 = vsel %vm2094_vm4, %v2097_v29, %v2100_v40  ;;  %v1686_v37 = vsel %vm1684_vm11, %v1685_v2, %v5848_v55 }
 0x221   : > { %v1762_v8 = vshll.u32 %v5777_v30, %v1760_v24  ;;  %v1852_v15 = vsel %vm1850_vm3, %v1851_v59, %v5798_v12  ;;  %v2196_v58 = vand.u32 3, %v6483_v33  ;;  %v1683_v7 = vsel %vm1681_vm2, %v5842_v43, %v1682_v60  ;;  %v6484_v12 = vld [vmem:[#allocation29_spill] sm:$0xff] }
 0x222   : > { %v1763_v17 = vshrl.u32 %v1745_v36, %v1761_v39  ;;  %v1766_v54 = vadd.s32 127, %v1765_v1  ;;  %vm6356_vm0 = vcmp.lt.s32.totalorder %v6464_v41, 0  ;;  %v1853_v5 = vadd.s32 %v1852_v15, %v1848_v11  ;;  %v6493_v15 = vld [vmem:[#allocation27_spill] sm:$0xff] }
 0x223   : > { %v5871_v25 = vsel %vm6355_vm10, nan, %v1583_v18  ;;  %vm1680_vm11 = vcmp.lt.s32.totalorder %v5730_v4, 2  ;;  %v5874_v30 = vand.u32 3, %v1782_v6  ;;  %v2299_v48 = vand.u32 3, %v6484_v12  ;;  %v6578_v6 = vld [vmem:[#allocation30_spill] sm:$0xff] }
 0x224   : > { %v1687_v51 = vsel %vm1680_vm11, %v1683_v7, %v1686_v37  ;;  %v1764_v9 = vor.u32 %v1763_v17, %v1762_v8  ;;  %v1767_v59 = vshll.u32 %v1766_v54, 23  ;;  %v1854_v35 = vadd.s32 536870912, %v1853_v5  ;;  %v6491_v37 = vld [vmem:[#allocation28_spill] sm:$0xff] }
 0x225   : > { %v5878_v36 = vadd.s32 %v5797_v31, %v5819_v47  ;;  %v5882_v29 = vsel %vm325_vm13, nan, %v1998_v56  ;;  %v5886_v18 = vsel %vm429_vm14, nan, %v2101_v20  ;;  %vm2197_vm2 = vcmp.lt.s32.totalorder %v2196_v58, 2  ;;  %v6490_v47 = vld [vmem:[#allocation32_spill] sm:$0xff] }
 0x226   : > { %v1768_v4 = vor.u32 4788187, %v1767_v59  ;;  %v6487_v40 = vand.u32 2147483647, %v6464_v41  ;;  %v1855_v11 = vshrl.u32 %v1854_v35, 30  ;;  %vm2198_vm8 = vcmp.eq.s32.totalorder %v2196_v58, 0 }
 0x227   : > { %vm2201_vm1 = vcmp.eq.s32.totalorder %v2196_v58, 2  ;;  %v5896_v31 = vsel %vm6354_vm6, nan, %v1687_v51  ;;  %vm2300_vm13 = vcmp.lt.s32.totalorder %v2299_v48, 2  ;;  %vm2301_vm7 = vcmp.eq.s32.totalorder %v2299_v48, 0 }
 0x228   : > { %vm5890_vm15 = vcmp.le.f32.partialorder %v6487_v40, 0.7853982  ;;  %v2402_v24 = vand.u32 3, %v6490_v47  ;;  %v1769_v56 = vand.u32 2147483647, %v1768_v4  ;;  %v1771_v39 = vcvt.s32.f32 %v1764_v9 }
 0x229   : > { %v1856_v1 = vshll.u32 %v1855_v11, 30  ;;  %v1879_v20 = vsub.s32 4, %v1855_v11  ;;  %v6492_v8 = vxor.u32 2147483648, %v6491_v37  ;;  %v6494_v7 = vxor.u32 2147483648, %v6493_v15 }
 0x22a   : > { %v6495_v54 = vxor.u32 2147483648, %v4880_v38  ;;  %vm2304_vm14 = vcmp.eq.s32.totalorder %v2299_v48, 2  ;;  %v1772_v51 = vmul.f32 %v1771_v39, %v1769_v56  ;;  %v6496_v9 = vxor.u32 2147483648, %v4811_v3 }
 0x22b   : > { %v2200_v33 = vsel %vm2198_vm8, %v6493_v15, %v6492_v8  ;;  %v2203_v17 = vsel %vm2201_vm1, %v6494_v7, %v6491_v37  ;;  %v5908_v59 = vsub.s32 %v1853_v5, %v1856_v1  ;;  %vm2404_vm5 = vcmp.eq.s32.totalorder %v2402_v24, 0 }
 0x22c   : > { %v2303_v12 = vsel %vm2301_vm7, %v4811_v3, %v6495_v54  ;;  %v2306_v35 = vsel %vm2304_vm14, %v6496_v9, %v4880_v38  ;;  %v1880_v49 = vsel %vm6356_vm0, %v1879_v20, %v1855_v11  ;;  %v6497_v28 = vxor.u32 2147483648, %v4931_v32  ;;  %v6504_v54 = vld [vmem:[#allocation5_spill] sm:$0xff]  ;;  %v6507_v9 = vld [vmem:[#allocation10_spill] sm:$0xff] }
 0x22d   : > { %vm2407_vm4 = vcmp.eq.s32.totalorder %v2402_v24, 2  ;;  %v2505_v40 = vand.u32 3, %v4972_v26  ;;  %v1773_v47 = vxor.u32 2147483648, %v1772_v51  ;;  %v1859_v56 = vsub.s32 0, %v5908_v59 }
 0x22e   : > { %v2406_v4 = vsel %vm2404_vm5, %v4892_v63, %v6497_v28  ;;  %v6498_v5 = vxor.u32 2147483648, %v4892_v63  ;;  %v2608_v3 = vand.u32 3, %v5023_v22  ;;  %v2204_v38 = vsel %vm2197_vm2, %v2200_v33, %v2203_v17  ;;  %v6503_v33 = vld [vmem:[#allocation36_spill] sm:$0xff]  ;;  %v6510_v28 = vld [vmem:[#allocation15_spill] sm:$0xff] }
 0x22f   : > { %v2307_v11 = vsel %vm2300_vm13, %v2303_v12, %v2306_v35  ;;  %vm2403_vm3 = vcmp.lt.s32.totalorder %v2402_v24, 2  ;;  %vm2507_vm11 = vcmp.eq.s32.totalorder %v2505_v40, 0  ;;  %v1774_v1 = vsel %vm1691_vm12, %v1773_v47, %v1772_v51  ;;  %v6512_v47 = vld [vmem:[#allocation39_spill] sm:$0xff] }
 0x230   : > { %v2409_v39 = vsel %vm2407_vm4, %v6498_v5, %v4931_v32  ;;  %v3749_v26 = vmin.u32 %v1859_v56, %v5908_v59  ;;  %v6499_v20 = vxor.u32 2147483648, %v5055_v42  ;;  %vm2510_vm8 = vcmp.eq.s32.totalorder %v2505_v40, 2 }
 0x231   : > { %v1777_v63 = vsel %vm5761_vm9, %v6459_v0, %v1774_v1  ;;  %v5937_v32 = vsel %vm5890_vm15, 0, %v1880_v49  ;;  %v2410_v22 = vsel %vm2403_vm3, %v2406_v4, %v2409_v39  ;;  %v6500_v58 = vxor.u32 2147483648, %v5004_v10  ;;  %v6513_v39 = vld [vmem:[#allocation43_spill] sm:$0xff] }
 0x232   : > { %v2509_v37 = vsel %vm2507_vm11, %v5004_v10, %v6499_v20  ;;  %3974 = vcosq.f32 %v1777_v63  ;;  %v1861_v24 = vclz %v3749_v26  ;;  %vm2506_vm12 = vcmp.lt.s32.totalorder %v2505_v40, 2  ;;  %v6506_v10 = vld [vmem:[#allocation37_spill] sm:$0xff]  ;;  %v6516_v26 = vld [vmem:[#allocation38_spill] sm:$0xff] }
 0x233   : > { %v2512_v48 = vsel %vm2510_vm8, %v6500_v58, %v5055_v42  ;;  %vm2610_vm2 = vcmp.eq.s32.totalorder %v2608_v3, 0  ;;  %3976 = vsinq.f32 %v1777_v63  ;;  %vm6501_vm1 = vweird.f32 %v4100_v19  ;;  %v6518_v58 = vld [vmem:[#allocation16_spill] sm:$0xff] }
 0x234   : > { %v5944_v8 = vsel %vm6501_vm1, nan, %v2204_v38  ;;  %v2513_v21 = vsel %vm2506_vm12, %v2509_v37, %v2512_v48  ;;  %v6502_v15 = vxor.u32 2147483648, %v5170_v45  ;;  %v3750_v17 = vadd.s32 4294967294, %v1861_v24  ;;  %v6520_v24 = vld [vmem:[#allocation19_spill] sm:$0xff] }
 0x235   : > { %vm6505_vm9 = vweird.f32 %v6504_v54  ;;  %vm2613_vm13 = vcmp.eq.s32.totalorder %v2608_v3, 2  ;;  %v2711_v42 = vand.u32 3, %v6506_v10  ;;  %v5955_v51 = vadd.s32 3, %v5937_v32  ;;  %v6523_v10 = vld [vmem:[#allocation44_spill] sm:$0xff] }
 0x236   : > { %v2612_v7 = vsel %vm2610_vm2, %v6503_v33, %v6502_v15  ;;  %v5951_v12 = vsel %vm6505_vm9, nan, %v2307_v11  ;;  %vm6508_vm7 = vweird.f32 %v6507_v9  ;;  %vm2609_vm14 = vcmp.lt.s32.totalorder %v2608_v3, 2 }
 0x237   : > { %v5959_v19 = vsel %vm6508_vm7, nan, %v2410_v22  ;;  %v6509_v35 = vxor.u32 2147483648, %v6503_v33  ;;  %vm1788_vm5 = vcmp.eq.s32.totalorder %v5874_v30, 2  ;;  %vm3751_vm4 = vcmp.lt.s32.totalorder %v3750_v17, 0 }
 0x238   : > { %vm6511_vm3 = vweird.f32 %v6510_v28  ;;  %v2814_v56 = vand.u32 3, %v6512_v47  ;;  %vm1785_vm11 = vcmp.eq.s32.totalorder %v5874_v30, 0  ;;  %v1864_v5 = vsel %vm3751_vm4, 0, %v3750_v17  ;;  %v6521_v17 = vld [vmem:[#allocation45_spill] sm:$0xff] }
 0x239   : > { %v2615_v49 = vsel %vm2613_vm13, %v6509_v35, %v5170_v45  ;;  %v5967_v4 = vsel %vm6511_vm3, nan, %v2513_v21  ;;  %vm2713_vm8 = vcmp.eq.s32.totalorder %v2711_v42, 0  ;;  %vm2716_vm12 = vcmp.eq.s32.totalorder %v2711_v42, 2  ;;  %v6514_v45 = vld [vmem:[#allocation41_spill] sm:$0xff] }
 0x23a   : > { %v2616_v40 = vsel %vm2609_vm14, %v2612_v7, %v2615_v49  ;;  %v2917_v3 = vand.u32 3, %v6513_v39  ;;  %v1865_v38 = vsub.s32 32, %v1864_v5  ;;  %v1869_v11 = vsub.s32 4294967266, %v1864_v5 }
 0x23b   : > { %v6515_v1 = vxor.u32 2147483648, %v6514_v45  ;;  %v6517_v37 = vxor.u32 2147483648, %v6516_v26  ;;  %v1866_v22 = vshll.u32 %v5908_v59, %v1864_v5  ;;  %vm6519_vm2 = vweird.f32 %v6518_v58 }
 0x23c   : > { %v5981_v48 = vsel %vm6519_vm2, nan, %v2616_v40  ;;  %vm2712_vm1 = vcmp.lt.s32.totalorder %v2711_v42, 2  ;;  %v3020_v21 = vand.u32 3, %v6520_v24  ;;  %vm1784_vm9 = vcmp.lt.s32.totalorder %v5874_v30, 2  ;;  %v5992_v42 = vpop.eup %3974  ;;  %v6525_v40 = vld [vmem:[#allocation48_spill] sm:$0xff] }
 0x23d   : > { %v2715_v20 = vsel %vm2713_vm8, %v6516_v26, %v6515_v1  ;;  %v2718_v63 = vsel %vm2716_vm12, %v6517_v37, %v6514_v45  ;;  %v1867_v15 = vshrl.u32 %v5878_v36, %v1865_v38  ;;  %v1870_v33 = vadd.s32 127, %v1869_v11  ;;  %v6527_v36 = vld [vmem:[#allocation47_spill] sm:$0xff]  ;;  %v5997_v39 = vpop.eup %3976  ;;  %v6529_v1 = vld [vmem:[#allocation6_spill] sm:$0xff] }
 0x23e   : > { %vm2816_vm13 = vcmp.eq.s32.totalorder %v2814_v56, 0  ;;  %vm2819_vm7 = vcmp.eq.s32.totalorder %v2814_v56, 2  ;;  %v2719_v7 = vsel %vm2712_vm1, %v2715_v20, %v2718_v63  ;;  %v6522_v54 = vxor.u32 2147483648, %v6521_v17 }
 0x23f   : > { %v6524_v59 = vxor.u32 2147483648, %v6523_v10  ;;  %vm2919_vm14 = vcmp.eq.s32.totalorder %v2917_v3, 0  ;;  %v1868_v49 = vor.u32 %v1867_v15, %v1866_v22  ;;  %v1871_v28 = vshll.u32 %v1870_v33, 23  ;;  %v6533_v33 = vld [vmem:[#allocation52_spill] sm:$0xff] }
 0x240   : > { %v2818_v9 = vsel %vm2816_vm13, %v6523_v10, %v6522_v54  ;;  %v6526_v47 = vxor.u32 2147483648, %v6525_v40  ;;  %vm2922_vm4 = vcmp.eq.s32.totalorder %v2917_v3, 2  ;;  %v1789_v38 = vxor.u32 2147483648, %v5992_v42  ;;  %v6535_v54 = vld [vmem:[#allocation51_spill] sm:$0xff] }
 0x241   : > { %v2821_v35 = vsel %vm2819_vm7, %v6524_v59, %v6521_v17  ;;  %vm2815_vm3 = vcmp.lt.s32.totalorder %v2814_v56, 2  ;;  %vm2918_vm8 = vcmp.lt.s32.totalorder %v2917_v3, 2  ;;  %v6528_v11 = vxor.u32 2147483648, %v6527_v36 }
 0x242   : > { %v2921_v5 = vsel %vm2919_vm14, %v6527_v36, %v6526_v47  ;;  %v6530_v26 = vand.u32 1, %v6529_v1  ;;  %v1786_v37 = vxor.u32 2147483648, %v5997_v39  ;;  %v1872_v63 = vor.u32 4788187, %v1871_v28 }
 0x243   : > { %v2924_v45 = vsel %vm2922_vm4, %v6528_v11, %v6525_v40  ;;  %v1875_v22 = vcvt.s32.f32 %v1868_v49  ;;  %v2822_v58 = vsel %vm2815_vm3, %v2818_v9, %v2821_v35  ;;  %v1790_v56 = vsel %vm1788_vm5, %v1789_v38, %v5997_v39  ;;  %v6537_v35 = vld [vmem:[#allocation7_spill] sm:$0xff]  ;;  %v6541_v40 = vld [vmem:[#allocation8_spill] sm:$0xff] }
 0x244   : > { %vm6005_vm12 = vcmp.eq.s32.totalorder %v6530_v26, 0  ;;  %v2925_v3 = vsel %vm2918_vm8, %v2921_v5, %v2924_v45  ;;  %vm3022_vm2 = vcmp.eq.s32.totalorder %v3020_v21, 0  ;;  %vm3025_vm1 = vcmp.eq.s32.totalorder %v3020_v21, 2  ;;  %v6545_v5 = vld [vmem:[#allocation17_spill] sm:$0xff]  ;;  %v6547_v45 = vld [vmem:[#allocation18_spill] sm:$0xff] }
 0x245   : > { %v1787_v24 = vsel %vm1785_vm11, %v5992_v42, %v1786_v37  ;;  %v1873_v15 = vand.u32 2147483647, %v1872_v63  ;;  %v6534_v17 = vxor.u32 2147483648, %v6533_v33  ;;  %v6536_v9 = vxor.u32 2147483648, %v6535_v54  ;;  %v6549_v26 = vld [vmem:[#allocation50_spill] sm:$0xff] }
 0x246   : > { %v6538_v49 = vand.u32 1, %v6537_v35  ;;  %v6542_v47 = vand.u32 1, %v6541_v40  ;;  %vm6546_vm11 = vweird.f32 %v6545_v5  ;;  %vm6548_vm14 = vweird.f32 %v6547_v45 }
 0x247   : > { %v3024_v10 = vsel %vm3022_vm2, %v6535_v54, %v6534_v17  ;;  %v3027_v59 = vsel %vm3025_vm1, %v6536_v9, %v6533_v33  ;;  %v6042_v11 = vsel %vm6546_vm11, nan, %v2719_v7  ;;  %v6046_v1 = vsel %vm6548_vm14, nan, %v2822_v58  ;;  %v6550_v33 = vld [vmem:[#allocation53_spill] sm:$0xff]  ;;  %v6559_v7 = vld [vmem:[#allocation12_spill] sm:$0xff] }
 0x248   : > { %vm6030_vm5 = vcmp.eq.s32.totalorder %v6538_v49, 0  ;;  %vm6036_vm7 = vcmp.eq.s32.totalorder %v6542_v47, 0  ;;  %v3123_v63 = vand.u32 3, %v6549_v26  ;;  %v3226_v17 = vand.u32 3, %v6550_v33  ;;  %v6551_v54 = vld [vmem:[#allocation9_spill] sm:$0xff]  ;;  %v6555_v49 = vld [vmem:[#allocation11_spill] sm:$0xff] }
 0x249   : > { %v6552_v9 = vand.u32 1, %v6551_v54  ;;  %v6556_v40 = vand.u32 1, %v6555_v49  ;;  %v6560_v5 = vand.u32 1, %v6559_v7  ;;  %v1876_v45 = vmul.f32 %v1875_v22, %v1873_v15  ;;  %v6564_v54 = vld [vmem:[#allocation13_spill] sm:$0xff]  ;;  %v6574_v15 = vld [vmem:[#allocation20_spill] sm:$0xff] }
 0x24a   : > { %vm6563_vm2 = vweird.f32 %v4366_v16  ;;  %vm3021_vm1 = vcmp.lt.s32.totalorder %v3020_v21, 2  ;;  %v3329_v33 = vand.u32 3, %v5674_v61  ;;  %v1791_v16 = vsel %vm1784_vm9, %v1787_v24, %v1790_v56  ;;  %v6572_v21 = vld [vmem:[#allocation24_spill] sm:$0xff] }
 0x24b   : > { %vm6052_vm4 = vcmp.eq.s32.totalorder %v6552_v9, 0  ;;  %vm6058_vm3 = vcmp.eq.s32.totalorder %v6556_v40, 0  ;;  %vm6064_vm8 = vcmp.eq.s32.totalorder %v6560_v5, 0  ;;  %v6070_v26 = vsel %vm6563_vm2, nan, %v2925_v3  ;;  %v6568_v40 = vld [vmem:[#allocation14_spill] sm:$0xff] }
 0x24c   : > { %v6565_v9 = vand.u32 1, %v6564_v54  ;;  %v6569_v7 = vand.u32 1, %v6568_v40  ;;  %v3028_v22 = vsel %vm3021_vm1, %v3024_v10, %v3027_v59  ;;  %vm3125_vm2 = vcmp.eq.s32.totalorder %v3123_v63, 0 }
 0x24d   : > { %vm3128_vm6 = vcmp.eq.s32.totalorder %v3123_v63, 2  ;;  %v1877_v61 = vxor.u32 2147483648, %v1876_v45  ;;  %v6573_v3 = vxor.u32 2147483648, %v6572_v21  ;;  %vm3228_vm10 = vcmp.eq.s32.totalorder %v3226_v17, 0 }
 0x24e   : > { %vm6075_vm11 = vcmp.eq.s32.totalorder %v6565_v9, 0  ;;  %vm6081_vm14 = vcmp.eq.s32.totalorder %v6569_v7, 0  ;;  %v6575_v9 = vxor.u32 2147483648, %v6574_v15  ;;  %vm3124_vm13 = vcmp.lt.s32.totalorder %v3123_v63, 2 }
 0x24f   : > { %v3127_v54 = vsel %vm3125_vm2, %v6574_v15, %v6573_v3  ;;  %vm3227_vm0 = vcmp.lt.s32.totalorder %v3226_v17, 2  ;;  %v3230_v30 = vsel %vm3228_vm10, %v5736_v53, %v1578_v62  ;;  %vm3231_vm9 = vcmp.eq.s32.totalorder %v3226_v17, 2 }
 0x250   : > { %v3130_v40 = vsel %vm3128_vm6, %v6575_v9, %v6572_v21  ;;  %vm6576_vm1 = vcmp.lt.s32.totalorder %v6464_v41, 0  ;;  %v3233_v10 = vsel %vm3231_vm9, %v1581_v34, %v5740_v13  ;;  %vm3331_vm2 = vcmp.eq.s32.totalorder %v3329_v33, 0 }
 0x251   : > { %v1878_v56 = vsel %vm6576_vm1, %v1877_v61, %v1876_v45  ;;  %v3131_v24 = vsel %vm3124_vm13, %v3127_v54, %v3130_v40  ;;  %vm3330_vm6 = vcmp.lt.s32.totalorder %v3329_v33, 2  ;;  %v3333_v63 = vsel %vm3331_vm2, %v5842_v43, %v1682_v60 }
 0x252   : > { %v1881_v59 = vsel %vm5890_vm15, %v6464_v41, %v1878_v56  ;;  %vm3334_vm10 = vcmp.eq.s32.totalorder %v3329_v33, 2  ;;  %v3234_v62 = vsel %vm3227_vm0, %v3230_v30, %v3233_v10  ;;  %v3432_v53 = vand.u32 3, %v5813_v50 }
 0x253   : > { %3978 = vcosq.f32 %v1881_v59  ;;  %v3336_v17 = vsel %vm3334_vm10, %v1685_v2, %v5848_v55  ;;  %vm6577_vm13 = vweird.f32 %v6459_v0  ;;  %v3545_v45 = vsel %vm6005_vm12, %v6578_v6, %v5882_v29  ;;  %v6583_v2 = vld [vmem:[#allocation31_spill] sm:$0xff]  ;;  %v6584_v29 = vld [vmem:[#allocation33_spill] sm:$0xff]  ;;  %v6588_v0 = vld [vmem:[#allocation42_spill] sm:$0xff] }
 0x254   : > { %v1792_v13 = vsel %vm6577_vm13, nan, %v1791_v16  ;;  %3980 = vsinq.f32 %v1881_v59  ;;  %v3337_v34 = vsel %vm3330_vm6, %v3333_v63, %v3336_v17  ;;  %vm6579_vm15 = vweird.f32 %v4370_v52  ;;  %3561 = vst [vmem:[%s6121_s28] sm:$0xff] %v3545_v45  ;;  %v6589_v16 = vld [vmem:[#allocation46_spill] sm:$0xff] }
 0x255   : > { %v3029_v60 = vsel %vm6579_vm15, nan, %v3028_v22  ;;  %vm6580_vm0 = vweird.f32 %v4381_v14  ;;  %vm3434_vm9 = vcmp.eq.s32.totalorder %v3432_v53, 0  ;;  %vm3437_vm1 = vcmp.eq.s32.totalorder %v3432_v53, 2  ;;  %v6590_v22 = vld [vmem:[#allocation49_spill] sm:$0xff] }
 0x256   : > { %v3132_v33 = vsel %vm6580_vm0, nan, %v3131_v24  ;;  %vm6581_vm2 = vweird.f32 %v4385_v46  ;;  %vm3433_vm6 = vcmp.lt.s32.totalorder %v3432_v53, 2  ;;  %v3436_v52 = vsel %vm3434_vm9, %v5992_v42, %v1786_v37 }
 0x257   : > { %v3235_v50 = vsel %vm6581_vm2, nan, %v3234_v62  ;;  %v3439_v14 = vsel %vm3437_vm1, %v1789_v38, %v5997_v39  ;;  %vm6582_vm10 = vweird.f32 %v6444_v44  ;;  %v3546_v46 = vsel %vm6030_vm5, %v6583_v2, %v5886_v18  ;;  %v6585_v39 = vld [vmem:[#allocation34_spill] sm:$0xff]  ;;  %v6586_v38 = vld [vmem:[#allocation35_spill] sm:$0xff]  ;;  %v6587_v18 = vld [vmem:[#allocation40_spill] sm:$0xff] }
 0x258   : > { %v3338_v43 = vsel %vm6582_vm10, nan, %v3337_v34  ;;  %v3440_v55 = vsel %vm3433_vm6, %v3436_v52, %v3439_v14  ;;  %v3547_v37 = vsel %vm6036_vm7, %v6584_v29, %v5944_v8  ;;  %v3548_v44 = vsel %vm6052_vm4, %v6585_v39, %v5951_v12  ;;  %3562 = vst [vmem:[%s6121_s28 + $0x8] sm:$0xff] %v3546_v46 }
 0x259   : > { %v3441_v42 = vsel %vm6577_vm13, nan, %v3440_v55  ;;  %v3549_v7 = vsel %vm6058_vm3, %v6586_v38, %v5959_v19  ;;  %v3550_v8 = vsel %vm6064_vm8, %v6587_v18, %v5967_v4  ;;  %3563 = vst [vmem:[%s6121_s28 + $0x10] sm:$0xff] %v3547_v37  ;;  %v3551_v12 = vsel %vm6075_vm11, %v6588_v0, %v5981_v48  ;;  %3564 = vst [vmem:[%s6121_s28 + $0x18] sm:$0xff] %v3548_v44 }
 0x25a   : > { %v3552_v19 = vsel %vm6081_vm14, %v6589_v16, %v6042_v11  ;;  %v3553_v61 = vsel %vm6005_vm12, %v6590_v22, %v6046_v1  ;;  %v3554_v4 = vsel %vm6030_vm5, %v5712_v27, %v6070_v26  ;;  %3565 = vst [vmem:[%s6121_s28 + $0x20] sm:$0xff] %v3549_v7  ;;  %3566 = vst [vmem:[%s6121_s28 + $0x28] sm:$0xff] %v3550_v8  ;;  %v1887_v36 = vand.u32 3, %v5955_v51 }
 0x25b   : > { %v3555_v48 = vsel %vm6036_vm7, %v5717_v23, %v3029_v60  ;;  %v3556_v20 = vsel %vm6052_vm4, %v5728_v57, %v3132_v33  ;;  %v3557_v28 = vsel %vm6058_vm3, %v5871_v25, %v3235_v50  ;;  %v3558_v27 = vsel %vm6064_vm8, %v5896_v31, %v3338_v43  ;;  %3567 = vst [vmem:[%s6121_s28 + $0x30] sm:$0xff] %v3551_v12 }
 0x25c   : > { %3568 = vst [vmem:[%s6121_s28 + $0x38] sm:$0xff] %v3552_v19  ;;  %3569 = vst [vmem:[%s6121_s28 + $0x40] sm:$0xff] %v3553_v61  ;;  %v3535_v23 = vand.u32 3, %v5937_v32  ;;  %v3559_v11 = vsel %vm6075_vm11, %v1792_v13, %v3441_v42  ;;  %vm1892_vm12 = vcmp.eq.s32.totalorder %v1887_v36, 2  ;;  %vm1889_vm7 = vcmp.eq.s32.totalorder %v1887_v36, 0 }
 0x25d   : > { %3570 = vst [vmem:[%s6121_s28 + $0x48] sm:$0xff] %v3554_v4  ;;  %3571 = vst [vmem:[%s6121_s28 + $0x50] sm:$0xff] %v3555_v48  ;;  %v3979_v57 = vpop.eup %3978  ;;  %vm1888_vm3 = vcmp.lt.s32.totalorder %v1887_v36, 2  ;;  %vm1885_vm11 = vweird.f32 %v6464_v41  ;;  %v3599_v41 = vld [vmem:[%s6121_s28] sm:$0xff] (%p4053_p4) }
 0x25e   : > { %3572 = vst [vmem:[%s6121_s28 + $0x58] sm:$0xff] %v3556_v20  ;;  %3573 = vst [vmem:[%s6121_s28 + $0x60] sm:$0xff] %v3557_v28  ;;  %v3981_v25 = vpop.eup %3980  ;;  %v1893_v1 = vxor.u32 2147483648, %v3979_v57  ;;  %vm3540_vm5 = vcmp.eq.s32.totalorder %v3535_v23, 2  ;;  %vm3537_vm4 = vcmp.eq.s32.totalorder %v3535_v23, 0  ;;  %vm3536_vm8 = vcmp.lt.s32.totalorder %v3535_v23, 2 }
 0x25f   : > { %3574 = vst [vmem:[%s6121_s28 + $0x68] sm:$0xff] %v3558_v27  ;;  %3575 = vst [vmem:[%s6121_s28 + $0x70] sm:$0xff] %v3559_v11  ;;  %v1890_v31 = vxor.u32 2147483648, %v3981_v25  ;;  %3583 = sbr.rel (!%p4053_p4) target bundleno = 622 (0x26e), region = 32  ;;  %v3601_v15 = vld [vmem:[%s6121_s28 + $0x8] sm:$0xff] (%p4053_p4) }
 0x260   : > { %v1894_v35 = vsel %vm1892_vm12, %v1893_v1, %v3981_v25  ;;  %v3542_v51 = vsel %vm3540_vm5, %v1893_v1, %v3981_v25  ;;  %v3603_v54 = vld [vmem:[%s6121_s28 + $0x10] sm:$0xff] (%p4053_p4)  ;;  %v3605_v5 = vld [vmem:[%s6121_s28 + $0x18] sm:$0xff] (%p4053_p4)  ;;  %3600 = vst [vmem:[%s3586_s4] sm:$0xff] (%p4053_p4), %v3599_v41  ;;  %3602 = vst [vmem:[%s3586_s4 + $0x8] sm:$0xff] (%p4053_p4), %v3601_v15 }
 0x261   : > { %v1891_v32 = vsel %vm1889_vm7, %v3979_v57, %v1890_v31  ;;  %v3539_v47 = vsel %vm3537_vm4, %v3979_v57, %v1890_v31  ;;  %v3607_v9 = vld [vmem:[%s6121_s28 + $0x20] sm:$0xff] (%p4053_p4)  ;;  %v3609_v40 = vld [vmem:[%s6121_s28 + $0x28] sm:$0xff] (%p4053_p4)  ;;  %3604 = vst [vmem:[%s3586_s4 + $0x10] sm:$0xff] (%p4053_p4), %v3603_v54  ;;  %3606 = vst [vmem:[%s3586_s4 + $0x18] sm:$0xff] (%p4053_p4), %v3605_v5 }
 0x262   : > { %v1895_v58 = vsel %vm1888_vm3, %v1891_v32, %v1894_v35  ;;  %v3543_v26 = vsel %vm3536_vm8, %v3539_v47, %v3542_v51  ;;  %3608 = vst [vmem:[%s3586_s4 + $0x20] sm:$0xff] (%p4053_p4), %v3607_v9  ;;  %3610 = vst [vmem:[%s3586_s4 + $0x28] sm:$0xff] (%p4053_p4), %v3609_v40  ;;  %v3611_v30 = vld [vmem:[%s6121_s28 + $0x30] sm:$0xff] (%p4053_p4) }
 0x263   : > { %v1896_v49 = vsel %vm1885_vm11, nan, %v1895_v58  ;;  %v3544_v21 = vsel %vm1885_vm11, nan, %v3543_v26  ;;  %v3613_v56 = vld [vmem:[%s6121_s28 + $0x38] sm:$0xff] (%p4053_p4)  ;;  %v3615_v24 = vld [vmem:[%s6121_s28 + $0x40] sm:$0xff] (%p4053_p4)  ;;  %3612 = vst [vmem:[%s3586_s4 + $0x30] sm:$0xff] (%p4053_p4), %v3611_v30 }
 0x264   : > { %v3560_v3 = vsel %vm6081_vm14, %v1896_v49, %v3544_v21  ;;  %3614 = vst [vmem:[%s3586_s4 + $0x38] sm:$0xff] (%p4053_p4), %v3613_v56  ;;  %3616 = vst [vmem:[%s3586_s4 + $0x80] sm:$0xff] (%p4053_p4), %v3615_v24  ;;  %v3617_v10 = vld [vmem:[%s6121_s28 + $0x48] sm:$0xff] (%p4053_p4)  ;;  %v3619_v59 = vld [vmem:[%s6121_s28 + $0x50] sm:$0xff] (%p4053_p4) }
 0x265   : > { %3576 = vst [vmem:[%s6121_s28 + $0x78] sm:$0xff] %v3560_v3  ;;  %v3621_v63 = vld [vmem:[%s6121_s28 + $0x58] sm:$0xff] (%p4053_p4)  ;;  %3618 = vst [vmem:[%s3586_s4 + $0x88] sm:$0xff] (%p4053_p4), %v3617_v10  ;;  %v3623_v62 = vld [vmem:[%s6121_s28 + $0x60] sm:$0xff] (%p4053_p4) }
 0x266   : > { %3620 = vst [vmem:[%s3586_s4 + $0x90] sm:$0xff] %v3619_v59  ;;  %3622 = vst [vmem:[%s3586_s4 + $0x98] sm:$0xff] %v3621_v63  ;;  %v3625_v17 = vld [vmem:[%s6121_s28 + $0x68] sm:$0xff]  ;;  %v3627_v53 = vld [vmem:[%s6121_s28 + $0x70] sm:$0xff] }
 0x267   : > { %3624 = vst [vmem:[%s3586_s4 + $0xa0] sm:$0xff] %v3623_v62  ;;  %3626 = vst [vmem:[%s3586_s4 + $0xa8] sm:$0xff] %v3625_v17 }
 0x268   : > { %3628 = vst [vmem:[%s3586_s4 + $0xb0] sm:$0xff] %v3627_v53 }
 0x26c   : > { %v3629_v13 = vld [vmem:[%s6121_s28 + $0x78] sm:$0xff] }
 0x26d   : > { %3630 = vst [vmem:[%s3586_s4 + $0xb8] sm:$0xff] %v3629_v13 }
 0x26e PF: > { %p9_p8 = scmp.ge.s32.totalorder %s4043_s13, 4   ;;  %s6591_s9 = smov %s4000_s10 }
 0x26f   : > { %s6592_s10 = smov %s4051_s16  ;;  %s6593_s11 = smov %s4043_s13 }
 0x270   :  { %11 = sbr.rel (!%p9_p8) target bundleno = 2 (0x2), region = 81 }

</bundles_post_ra>
